<compile_context>
chip_gen: v6e
topology: v6e:2x2x1
jax: 0.10.0
libtpu: 0.0.40
codegen_flags: <defaults>
</compile_context>

<pallas_src>
import functools

import jax
import jax.numpy as jnp
from jax.experimental import pallas as pl
from jax.experimental.pallas import tpu as pltpu

LANE = 128
VMEM_BUDGET = 40 * 1024 * 1024       # conservative working budget (ok on v5e/v6e/v7x)


def _round_up(v, m):
    return (v + m - 1) // m * m


# ------------------------------- kernels -------------------------------------
def _sage_layer_resident_kernel(a_ref, x_ref, wl_ref, wr_ref, b_ref,
                                pre_ref, act_ref, acc_ref, deg_ref, *, tm, tk):
    """SAGE layer, x resident in VMEM. grid = (rows i, aggregation k).

    a_ref  : [tm, tk]        int8 0/1 adjacency tile
    x_ref  : [n_pad, f_pad]  bf16 features (relu already applied for layers > 0)
    wl_ref : [f_pad, h_pad]  bf16 lin_l weight (applied to the mean aggregation)
    wr_ref : [f_pad, h_pad]  bf16 lin_r weight (applied to the root features)
    b_ref  : [1, h_pad]      f32  lin_l bias
    pre_ref: [tm, h_pad]     f32  pre-activation output (module output)
    act_ref: [tm, h_pad]     bf16 relu(pre), next layer's input
    acc_ref: [tm, f_pad]     f32  scratch: sum of neighbor features
    deg_ref: [tm, 1]         f32  scratch: neighbor count
    """
    i = pl.program_id(0)
    k = pl.program_id(1)

    @pl.when(k == 0)
    def _():
        acc_ref[...] = jnp.zeros_like(acc_ref)
        deg_ref[...] = jnp.zeros_like(deg_ref)
        xi = x_ref[pl.ds(pl.multiple_of(i * tm, tm), tm), :]
        pre_ref[...] = (jnp.dot(xi, wr_ref[...], preferred_element_type=jnp.float32)
                        + b_ref[...])

    a_f32 = a_ref[...].astype(jnp.float32)
    deg_ref[...] += jnp.sum(a_f32, axis=-1, keepdims=True)
    xk = x_ref[pl.ds(pl.multiple_of(k * tk, tk), tk), :]
    acc_ref[...] += jnp.dot(a_f32.astype(jnp.bfloat16), xk,
                            preferred_element_type=jnp.float32)

    @pl.when(k == pl.num_programs(1) - 1)
    def _():
        deg = deg_ref[...]
        inv = jnp.where(deg > 0.0, 1.0 / deg, 0.0)          # exact mean, f32 scaling
        agg = (acc_ref[...] * inv).astype(jnp.bfloat16)
        pre = pre_ref[...] + jnp.dot(agg, wl_ref[...],
                                     preferred_element_type=jnp.float32)
        pre_ref[...] = pre
        act_ref[...] = jnp.maximum(pre, 0.0).astype(jnp.bfloat16)


def _sage_layer_stream_kernel(a_ref, xk_ref, xi_ref, wl_ref, wr_ref, b_ref,
                              pre_ref, act_ref, acc_ref, deg_ref):
    """Same computation, x streamed via tiled BlockSpecs (x too large for VMEM)."""
    k = pl.program_id(1)

    @pl.when(k == 0)
    def _():
        acc_ref[...] = jnp.zeros_like(acc_ref)
        deg_ref[...] = jnp.zeros_like(deg_ref)
        pre_ref[...] = (jnp.dot(xi_ref[...], wr_ref[...],
                                preferred_element_type=jnp.float32)
                        + b_ref[...])

    a_f32 = a_ref[...].astype(jnp.float32)
    deg_ref[...] += jnp.sum(a_f32, axis=-1, keepdims=True)
    acc_ref[...] += jnp.dot(a_f32.astype(jnp.bfloat16), xk_ref[...],
                            preferred_element_type=jnp.float32)

    @pl.when(k == pl.num_programs(1) - 1)
    def _():
        deg = deg_ref[...]
        inv = jnp.where(deg > 0.0, 1.0 / deg, 0.0)
        agg = (acc_ref[...] * inv).astype(jnp.bfloat16)
        pre = pre_ref[...] + jnp.dot(agg, wl_ref[...],
                                     preferred_element_type=jnp.float32)
        pre_ref[...] = pre
        act_ref[...] = jnp.maximum(pre, 0.0).astype(jnp.bfloat16)


# ------------------------------ layer wrapper --------------------------------
def _layer_vmem_bytes(n_pad, f_pad, h_pad, tm, tk, resident):
    by = 2 * tm * tk * 1                                   # A int8 tiles, double-buffered
    if resident:
        by += 2 * n_pad * f_pad * 2                        # resident bf16 x
    else:
        by += 2 * tk * f_pad * 2 + 2 * tm * f_pad * 2      # xk / xi bf16 tiles
    by += 2 * 2 * f_pad * h_pad * 2                        # W_l + W_r bf16
    by += 2 * 8 * h_pad * 4                                # bias
    by += 2 * tm * h_pad * 4 + 2 * tm * h_pad * 2          # pre (f32) + act (bf16) outputs
    by += tm * f_pad * 4 + tm * LANE * 4                   # acc + deg scratch
    return by


def sage_layer(a_i8, x_bf16, w_l, w_r, b, *, tm, tk, force_streaming=False):
    """One SAGEConv layer on padded inputs -> (pre f32 [n_pad,h_pad], relu(pre) bf16)."""
    n_pad = a_i8.shape[0]
    f_pad = x_bf16.shape[1]
    h_pad = w_l.shape[1]
    grid = (n_pad // tm, n_pad // tk)

    resident = (not force_streaming) and (
        _layer_vmem_bytes(n_pad, f_pad, h_pad, tm, tk, True) <= VMEM_BUDGET)
    need = _layer_vmem_bytes(n_pad, f_pad, h_pad, tm, tk, resident)
    vmem_limit = min(max(need + (8 << 20), 32 << 20), 56 << 20)

    x_bytes = (n_pad * f_pad * 2 if resident
               else grid[0] * n_pad * f_pad * 2 + n_pad * f_pad * 2)
    flops = 2 * n_pad * n_pad * f_pad + 4 * n_pad * f_pad * h_pad
    bytes_accessed = (n_pad * n_pad * 1 + x_bytes
                      + 2 * f_pad * h_pad * 2 + h_pad * 4
                      + n_pad * h_pad * (4 + 2))

    w_spec = pl.BlockSpec((f_pad, h_pad), lambda i, k: (0, 0))
    b_spec = pl.BlockSpec((1, h_pad), lambda i, k: (0, 0))
    out_specs = [pl.BlockSpec((tm, h_pad), lambda i, k: (i, 0)),
                 pl.BlockSpec((tm, h_pad), lambda i, k: (i, 0))]
    out_shape = (jax.ShapeDtypeStruct((n_pad, h_pad), jnp.float32),
                 jax.ShapeDtypeStruct((n_pad, h_pad), jnp.bfloat16))
    scratch = [pltpu.VMEM((tm, f_pad), jnp.float32),
               pltpu.VMEM((tm, 1), jnp.float32)]

    if resident:
        kernel = functools.partial(_sage_layer_resident_kernel, tm=tm, tk=tk)
        in_specs = [
            pl.BlockSpec((tm, tk), lambda i, k: (i, k)),           # A int8 tile
            pl.BlockSpec((n_pad, f_pad), lambda i, k: (0, 0)),     # x resident
            w_spec, w_spec, b_spec,
        ]
        operands = (a_i8, x_bf16, w_l, w_r, b)
    else:
        kernel = _sage_layer_stream_kernel
        in_specs = [
            pl.BlockSpec((tm, tk), lambda i, k: (i, k)),           # A int8 tile
            pl.BlockSpec((tk, f_pad), lambda i, k: (k, 0)),        # x (aggregation side)
            pl.BlockSpec((tm, f_pad), lambda i, k: (i, 0)),        # x (root side)
            w_spec, w_spec, b_spec,
        ]
        operands = (a_i8, x_bf16, x_bf16, w_l, w_r, b)

    return pl.pallas_call(
        kernel,
        out_shape=out_shape,
        grid_spec=pltpu.PrefetchScalarGridSpec(
            num_scalar_prefetch=0,
            grid=grid,
            in_specs=in_specs,
            out_specs=out_specs,
            scratch_shapes=scratch,
        ),
        compiler_params=pltpu.CompilerParams(
            dimension_semantics=("parallel", "arbitrary"),
            vmem_limit_bytes=vmem_limit),
        cost_estimate=pl.CostEstimate(flops=flops, transcendentals=0,
                                      bytes_accessed=bytes_accessed),
    )(*operands)


# ------------------------------- forward -------------------------------------
@functools.partial(jax.jit, static_argnames=("tile_n", "force_streaming"))
def _forward_padded(x, adj, params, *, tile_n, force_streaming):
    n, fin = x.shape
    h = params[0][0].shape[1]
    fin_pad = _round_up(fin, LANE)
    h_pad = _round_up(h, LANE)
    n_pad = _round_up(n, tile_n)

    # Build padded inputs directly in their storage dtypes (no f32 N^2 intermediate).
    x_pad = jnp.zeros((n_pad, fin_pad), jnp.bfloat16).at[:n, :fin].set(
        x.astype(jnp.bfloat16))
    a_pad = jnp.zeros((n_pad, n_pad), jnp.int8).at[:n, :n].set(
        (adj > 0).astype(jnp.int8))

    cur = x_pad
    pres = []
    cin, cin_pad = fin, fin_pad
    for (w_l, w_r, b) in params:
        wl_p = jnp.zeros((cin_pad, h_pad), jnp.bfloat16).at[:cin, :h].set(
            w_l.astype(jnp.bfloat16))
        wr_p = jnp.zeros((cin_pad, h_pad), jnp.bfloat16).at[:cin, :h].set(
            w_r.astype(jnp.bfloat16))
        b_p = jnp.zeros((1, h_pad), jnp.float32).at[0, :h].set(b)
        pre, act = sage_layer(a_pad, cur, wl_p, wr_p, b_p,
                              tm=tile_n, tk=tile_n,
                              force_streaming=force_streaming)
        pres.append(pre)          # appended BEFORE relu, as in the PyTorch forward
        cur = act                 # bf16 relu(pre); dropout(training=False) == identity
        cin, cin_pad = h, h_pad

    out = jnp.stack(pres, axis=1)                    # [n_pad, L, h_pad]
    return out[:n, :, :h]


def autolink_l3seal_forward(x, adj, params, *, tile=512, force_streaming=False):
    """AutoLink_l3Seal.forward (SAGE, inference): stacked hidden states [N, L, H].

    adj is the (dense, 0/1) adjacency; mean aggregation over neighbors is computed
    in-kernel from the mask and exact per-row degrees.
    """
    n = x.shape[0]
    n_lane = _round_up(n, LANE)
    tile_n = min(tile, n_lane)
    # Prefer >= 2 row tiles so the 'parallel' axis can split across v7x's 2 TensorCores.
    if n_lane // tile_n < 2 and n_lane >= 2 * LANE:
        tile_n = _round_up((n_lane + 1) // 2, LANE)
    return _forward_padded(x, adj, tuple(params), tile_n=tile_n,
                           force_streaming=force_streaming)


# ------------------------------ setup helpers --------------------------------
def init_params(key, in_channels, hidden_channels, num_layers):
    """Glorot-ish init: per layer (W_l [Fin,H], W_r [Fin,H], b [H])."""
    params = []
    fin = in_channels
    for _ in range(num_layers):
        k1, k2, k3, key = jax.random.split(key, 4)
        scale = (6.0 / (fin + hidden_channels)) ** 0.5
        w_l = jax.random.uniform(k1, (fin, hidden_channels), jnp.float32, -scale, scale)
        w_r = jax.random.uniform(k2, (fin, hidden_channels), jnp.float32, -scale, scale)
        b = jax.random.uniform(k3, (hidden_channels,), jnp.float32, -0.1, 0.1)
        params.append((w_l, w_r, b))
        fin = hidden_channels
    return params


def make_adjacency(key, n):
    """Dense random 0/1 adjacency, no self loops."""
    a = (jax.random.uniform(key, (n, n)) < 0.3).astype(jnp.float32)
    return a * (1.0 - jnp.eye(n, dtype=jnp.float32))


def reference_forward(x, adj, params):
    """Pure-JAX f32 reference mirroring the PyTorch forward (inference)."""
    deg = jnp.sum(adj, axis=1, keepdims=True)
    a_norm = jnp.where(deg > 0, adj / jnp.maximum(deg, 1.0), 0.0)
    cur = x
    outs = []
    for (w_l, w_r, b) in params:
        pre = (a_norm @ cur) @ w_l + cur @ w_r + b
        outs.append(pre)
        cur = jnp.maximum(pre, 0.0)        # relu; dropout(training=False) == identity
    return jnp.stack(outs, axis=1)


if __name__ == "__main__":
    IN_CHANNELS = 8
    HIDDEN = 32
    NUM_LAYERS = 3          # the "l3" in AutoLink_l3Seal
    DROPOUT = 0.5           # unused at inference

    key = jax.random.PRNGKey(0)
    k_x, k_a, k_p, k_x2, k_a2 = jax.random.split(key, 5)
    params = init_params(k_p, IN_CHANNELS, HIDDEN, NUM_LAYERS)

    # ---- test 1: small N, single tile, resident-x path ----
    N = 16
    x = jax.random.normal(k_x, (N, IN_CHANNELS), jnp.float32)
    adj = make_adjacency(k_a, N)
    out = autolink_l3seal_forward(x, adj, params)
    jax.block_until_ready(out)
    assert out.shape == (N, NUM_LAYERS, HIDDEN)
    assert bool(jnp.all(jnp.isfinite(out)))
    ref = reference_forward(x, adj, params)
    err = float(jnp.max(jnp.abs(out - ref)))
    tol = 2e-2 + 5e-2 * float(jnp.max(jnp.abs(ref)))      # loose: bf16 MXU operands
    assert err < tol, (err, tol)

    # ---- test 2: multi-tile grid + streaming-x fallback path ----
    N2 = 272
    x2 = jax.random.normal(k_x2, (N2, IN_CHANNELS), jnp.float32)
    adj2 = make_adjacency(k_a2, N2)
    out2 = autolink_l3seal_forward(x2, adj2, params, tile=128, force_streaming=True)
    jax.block_until_ready(out2)
    assert out2.shape == (N2, NUM_LAYERS, HIDDEN)
    assert bool(jnp.all(jnp.isfinite(out2)))
    ref2 = reference_forward(x2, adj2, params)
    err2 = float(jnp.max(jnp.abs(out2 - ref2)))
    tol2 = 2e-2 + 5e-2 * float(jnp.max(jnp.abs(ref2)))
    assert err2 < tol2, (err2, tol2)

    print("KERNEL_OK")
</pallas_src>

<mosaic_0001>
module attributes {stable_mosaic.version = 11 : i64} {
  func.func @_sage_layer_resident_kernel(%arg0: i32, %arg1: i32, %arg2: memref<128x128xi8, #tpu.memory_space<vmem>>, %arg3: memref<128x128xbf16, #tpu.memory_space<vmem>>, %arg4: memref<128x128xbf16, #tpu.memory_space<vmem>>, %arg5: memref<128x128xbf16, #tpu.memory_space<vmem>>, %arg6: memref<1x128xf32, #tpu.memory_space<vmem>>, %arg7: memref<128x128xf32, #tpu.memory_space<vmem>>, %arg8: memref<128x128xbf16, #tpu.memory_space<vmem>>, %arg9: memref<128x128xf32, #tpu.memory_space<vmem>>, %arg10: memref<128x1xf32, #tpu.memory_space<vmem>>) attributes {dimension_semantics = [#tpu.dimension_semantics<parallel>, #tpu.dimension_semantics<arbitrary>], iteration_bounds = array<i64: 1, 1>, scalar_prefetch = 0 : i64, scratch_operands = 2 : i64, tpu.core_type = #tpu.core_type<tc>, window_params = [{transform_indices = @transform_0, window_bounds = array<i64: 128, 128>}, {pipeline_mode = #tpu.pipeline_mode<synchronous>, transform_indices = @transform_1, window_bounds = array<i64: 128, 128>}, {pipeline_mode = #tpu.pipeline_mode<synchronous>, transform_indices = @transform_2, window_bounds = array<i64: 128, 128>}, {pipeline_mode = #tpu.pipeline_mode<synchronous>, transform_indices = @transform_3, window_bounds = array<i64: 128, 128>}, {pipeline_mode = #tpu.pipeline_mode<synchronous>, transform_indices = @transform_4, window_bounds = array<i64: 1, 128>}, {transform_indices = @transform_5, window_bounds = array<i64: 128, 128>}, {transform_indices = @transform_6, window_bounds = array<i64: 128, 128>}]} {
    %c0_i32 = arith.constant 0 : i32
    %0 = arith.cmpi eq, %arg1, %c0_i32 : i32
    %1 = arith.extui %0 : i1 to i32
    %c0_i32_0 = arith.constant 0 : i32
    %2 = arith.cmpi ne, %1, %c0_i32_0 : i32
    scf.if %2 {
      %cst_14 = arith.constant 0.000000e+00 : f32
      %22 = vector.broadcast %cst_14 : f32 to vector<128x128xf32>
      %c0_15 = arith.constant 0 : index
      %c0_16 = arith.constant 0 : index
      %23 = vector.load %arg9[%c0_15, %c0_16] : memref<128x128xf32, #tpu.memory_space<vmem>>, vector<128x128xf32>
      tpu.vector_store %arg9[%c0_15, %c0_16], %22 {strides = array<i32>} : memref<128x128xf32, #tpu.memory_space<vmem>>, vector<128x128xf32>,
      %cst_17 = arith.constant 0.000000e+00 : f32
      %24 = vector.broadcast %cst_17 : f32 to vector<128x1xf32>
      %c0_18 = arith.constant 0 : index
      %c0_19 = arith.constant 0 : index
      %25 = vector.load %arg10[%c0_18, %c0_19] : memref<128x1xf32, #tpu.memory_space<vmem>>, vector<128x1xf32>
      tpu.vector_store %arg10[%c0_18, %c0_19], %24 {strides = array<i32>} : memref<128x1xf32, #tpu.memory_space<vmem>>, vector<128x1xf32>,
      %c128_i32_20 = arith.constant 128 : i32
      %26 = arith.muli %arg0, %c128_i32_20 : i32
      %27 = tpu.assume_multiple %26, 128 : i32
      %28 = arith.index_cast %27 : i32 to index
      %c0_21 = arith.constant 0 : index
      %29 = vector.load %arg3[%28, %c0_21] : memref<128x128xbf16, #tpu.memory_space<vmem>>, vector<128x128xbf16>
      %c0_22 = arith.constant 0 : index
      %c0_23 = arith.constant 0 : index
      %30 = vector.load %arg5[%c0_22, %c0_23] : memref<128x128xbf16, #tpu.memory_space<vmem>>, vector<128x128xbf16>
      %cst_24 = arith.constant dense<0.000000e+00> : vector<128x128xf32>
      %31 = tpu.matmul %29, %30, %cst_24 {dimension_numbers = #tpu.dot_dimension_numbers<[1], [0], [0], [1], [0, 0, 1, 1], [], []>} : vector<128x128xbf16>, vector<128x128xbf16>, vector<128x128xf32> -> vector<128x128xf32>
      %c0_25 = arith.constant 0 : index
      %c0_26 = arith.constant 0 : index
      %32 = vector.load %arg6[%c0_25, %c0_26] : memref<1x128xf32, #tpu.memory_space<vmem>>, vector<1x128xf32>
      %33 = vector.broadcast %32 : vector<1x128xf32> to vector<128x128xf32>
      %34 = arith.addf %31, %33 : vector<128x128xf32>
      %c0_27 = arith.constant 0 : index
      %c0_28 = arith.constant 0 : index
      %35 = vector.load %arg7[%c0_27, %c0_28] : memref<128x128xf32, #tpu.memory_space<vmem>>, vector<128x128xf32>
      tpu.vector_store %arg7[%c0_27, %c0_28], %34 {strides = array<i32>} : memref<128x128xf32, #tpu.memory_space<vmem>>, vector<128x128xf32>,
    } else {
    }
    %c0 = arith.constant 0 : index
    %c0_1 = arith.constant 0 : index
    %3 = vector.load %arg2[%c0, %c0_1] : memref<128x128xi8, #tpu.memory_space<vmem>>, vector<128x128xi8>
    %4 = arith.sitofp %3 : vector<128x128xi8> to vector<128x128xf32>
    %c0_2 = arith.constant 0 : index
    %c0_3 = arith.constant 0 : index
    %5 = vector.load %arg10[%c0_2, %c0_3] : memref<128x1xf32, #tpu.memory_space<vmem>>, vector<128x1xf32>
    %cst = arith.constant dense<0.000000e+00> : vector<128xf32>
    %6 = vector.multi_reduction <add>, %4, %cst [1] : vector<128x128xf32> to vector<128xf32>
    %7 = vector.shape_cast %6 : vector<128xf32> to vector<128x1xf32>
    %8 = arith.addf %5, %7 : vector<128x1xf32>
    %c0_4 = arith.constant 0 : index
    %c0_5 = arith.constant 0 : index
    %9 = vector.load %arg10[%c0_4, %c0_5] : memref<128x1xf32, #tpu.memory_space<vmem>>, vector<128x1xf32>
    tpu.vector_store %arg10[%c0_4, %c0_5], %8 {strides = array<i32>} : memref<128x1xf32, #tpu.memory_space<vmem>>, vector<128x1xf32>,
    %c128_i32 = arith.constant 128 : i32
    %10 = arith.muli %arg1, %c128_i32 : i32
    %11 = tpu.assume_multiple %10, 128 : i32
    %12 = arith.index_cast %11 : i32 to index
    %c0_6 = arith.constant 0 : index
    %13 = vector.load %arg3[%12, %c0_6] : memref<128x128xbf16, #tpu.memory_space<vmem>>, vector<128x128xbf16>
    %c0_7 = arith.constant 0 : index
    %c0_8 = arith.constant 0 : index
    %14 = vector.load %arg9[%c0_7, %c0_8] : memref<128x128xf32, #tpu.memory_space<vmem>>, vector<128x128xf32>
    %15 = arith.truncf %4 : vector<128x128xf32> to vector<128x128xbf16>
    %cst_9 = arith.constant dense<0.000000e+00> : vector<128x128xf32>
    %16 = tpu.matmul %15, %13, %cst_9 {dimension_numbers = #tpu.dot_dimension_numbers<[1], [0], [0], [1], [0, 0, 1, 1], [], []>} : vector<128x128xbf16>, vector<128x128xbf16>, vector<128x128xf32> -> vector<128x128xf32>
    %17 = arith.addf %14, %16 : vector<128x128xf32>
    %c0_10 = arith.constant 0 : index
    %c0_11 = arith.constant 0 : index
    %18 = vector.load %arg9[%c0_10, %c0_11] : memref<128x128xf32, #tpu.memory_space<vmem>>, vector<128x128xf32>
    tpu.vector_store %arg9[%c0_10, %c0_11], %17 {strides = array<i32>} : memref<128x128xf32, #tpu.memory_space<vmem>>, vector<128x128xf32>,
    %c0_i32_12 = arith.constant 0 : i32
    %19 = arith.cmpi eq, %arg1, %c0_i32_12 : i32
    %20 = arith.extui %19 : i1 to i32
    %c0_i32_13 = arith.constant 0 : i32
    %21 = arith.cmpi ne, %20, %c0_i32_13 : i32
    scf.if %21 {
      %c0_14 = arith.constant 0 : index
      %c0_15 = arith.constant 0 : index
      %22 = vector.load %arg10[%c0_14, %c0_15] : memref<128x1xf32, #tpu.memory_space<vmem>>, vector<128x1xf32>
      %cst_16 = arith.constant 0.000000e+00 : f32
      %23 = vector.broadcast %cst_16 : f32 to vector<128x1xf32>
      %24 = arith.cmpf ogt, %22, %23 : vector<128x1xf32>
      %cst_17 = arith.constant 1.000000e+00 : f32
      %25 = vector.broadcast %cst_17 : f32 to vector<128x1xf32>
      %26 = arith.divf %25, %22 : vector<128x1xf32>
      %cst_18 = arith.constant 0.000000e+00 : f32
      %27 = vector.broadcast %cst_18 : f32 to vector<128x1xf32>
      %28 = arith.select %24, %26, %27 : vector<128x1xi1>, vector<128x1xf32>
      %c0_19 = arith.constant 0 : index
      %c0_20 = arith.constant 0 : index
      %29 = vector.load %arg9[%c0_19, %c0_20] : memref<128x128xf32, #tpu.memory_space<vmem>>, vector<128x128xf32>
      %30 = vector.broadcast %28 : vector<128x1xf32> to vector<128x128xf32>
      %31 = arith.mulf %29, %30 : vector<128x128xf32>
      %32 = arith.truncf %31 : vector<128x128xf32> to vector<128x128xbf16>
      %c0_21 = arith.constant 0 : index
      %c0_22 = arith.constant 0 : index
      %33 = vector.load %arg7[%c0_21, %c0_22] : memref<128x128xf32, #tpu.memory_space<vmem>>, vector<128x128xf32>
      %c0_23 = arith.constant 0 : index
      %c0_24 = arith.constant 0 : index
      %34 = vector.load %arg4[%c0_23, %c0_24] : memref<128x128xbf16, #tpu.memory_space<vmem>>, vector<128x128xbf16>
      %cst_25 = arith.constant dense<0.000000e+00> : vector<128x128xf32>
      %35 = tpu.matmul %32, %34, %cst_25 {dimension_numbers = #tpu.dot_dimension_numbers<[1], [0], [0], [1], [0, 0, 1, 1], [], []>} : vector<128x128xbf16>, vector<128x128xbf16>, vector<128x128xf32> -> vector<128x128xf32>
      %36 = arith.addf %33, %35 : vector<128x128xf32>
      %c0_26 = arith.constant 0 : index
      %c0_27 = arith.constant 0 : index
      %37 = vector.load %arg7[%c0_26, %c0_27] : memref<128x128xf32, #tpu.memory_space<vmem>>, vector<128x128xf32>
      tpu.vector_store %arg7[%c0_26, %c0_27], %36 {strides = array<i32>} : memref<128x128xf32, #tpu.memory_space<vmem>>, vector<128x128xf32>,
      %cst_28 = arith.constant 0.000000e+00 : f32
      %38 = vector.broadcast %cst_28 : f32 to vector<128x128xf32>
      %39 = arith.maximumf %36, %38 : vector<128x128xf32>
      %40 = arith.truncf %39 : vector<128x128xf32> to vector<128x128xbf16>
      %c0_29 = arith.constant 0 : index
      %c0_30 = arith.constant 0 : index
      %41 = vector.load %arg8[%c0_29, %c0_30] : memref<128x128xbf16, #tpu.memory_space<vmem>>, vector<128x128xbf16>
      tpu.vector_store %arg8[%c0_29, %c0_30], %40 {strides = array<i32>} : memref<128x128xbf16, #tpu.memory_space<vmem>>, vector<128x128xbf16>,
    } else {
    }
    return
  }
  func.func @transform_0(%arg0: i32, %arg1: i32) -> (i32, i32) {
    %c0_i32 = arith.constant 0 : i32
    return %arg0, %arg1 : i32, i32
  }
  func.func @transform_1(%arg0: i32, %arg1: i32) -> (i32, i32) {
    %c0_i32 = arith.constant 0 : i32
    %c0_i32_0 = arith.constant 0 : i32
    %c0_i32_1 = arith.constant 0 : i32
    return %c0_i32, %c0_i32_0 : i32, i32
  }
  func.func @transform_2(%arg0: i32, %arg1: i32) -> (i32, i32) {
    %c0_i32 = arith.constant 0 : i32
    %c0_i32_0 = arith.constant 0 : i32
    %c0_i32_1 = arith.constant 0 : i32
    return %c0_i32, %c0_i32_0 : i32, i32
  }
  func.func @transform_3(%arg0: i32, %arg1: i32) -> (i32, i32) {
    %c0_i32 = arith.constant 0 : i32
    %c0_i32_0 = arith.constant 0 : i32
    %c0_i32_1 = arith.constant 0 : i32
    return %c0_i32, %c0_i32_0 : i32, i32
  }
  func.func @transform_4(%arg0: i32, %arg1: i32) -> (i32, i32) {
    %c0_i32 = arith.constant 0 : i32
    %c0_i32_0 = arith.constant 0 : i32
    %c0_i32_1 = arith.constant 0 : i32
    return %c0_i32, %c0_i32_0 : i32, i32
  }
  func.func @transform_5(%arg0: i32, %arg1: i32) -> (i32, i32) {
    %c0_i32 = arith.constant 0 : i32
    %c0_i32_0 = arith.constant 0 : i32
    return %arg0, %c0_i32 : i32, i32
  }
  func.func @transform_6(%arg0: i32, %arg1: i32) -> (i32, i32) {
    %c0_i32 = arith.constant 0 : i32
    %c0_i32_0 = arith.constant 0 : i32
    return %arg0, %c0_i32 : i32, i32
  }
}

module attributes {stable_mosaic.version = 11 : i64} {
  func.func @_sage_layer_resident_kernel(%arg0: i32, %arg1: i32, %arg2: memref<128x128xi8, #tpu.memory_space<vmem>>, %arg3: memref<128x128xbf16, #tpu.memory_space<vmem>>, %arg4: memref<128x128xbf16, #tpu.memory_space<vmem>>, %arg5: memref<128x128xbf16, #tpu.memory_space<vmem>>, %arg6: memref<1x128xf32, #tpu.memory_space<vmem>>, %arg7: memref<128x128xf32, #tpu.memory_space<vmem>>, %arg8: memref<128x128xbf16, #tpu.memory_space<vmem>>, %arg9: memref<128x128xf32, #tpu.memory_space<vmem>>, %arg10: memref<128x1xf32, #tpu.memory_space<vmem>>) attributes {dimension_semantics = [#tpu.dimension_semantics<parallel>, #tpu.dimension_semantics<arbitrary>], iteration_bounds = array<i64: 1, 1>, scalar_prefetch = 0 : i64, scratch_operands = 2 : i64, tpu.core_type = #tpu.core_type<tc>, window_params = [{transform_indices = @transform_0, window_bounds = array<i64: 128, 128>}, {pipeline_mode = #tpu.pipeline_mode<synchronous>, transform_indices = @transform_1, window_bounds = array<i64: 128, 128>}, {pipeline_mode = #tpu.pipeline_mode<synchronous>, transform_indices = @transform_2, window_bounds = array<i64: 128, 128>}, {pipeline_mode = #tpu.pipeline_mode<synchronous>, transform_indices = @transform_3, window_bounds = array<i64: 128, 128>}, {pipeline_mode = #tpu.pipeline_mode<synchronous>, transform_indices = @transform_4, window_bounds = array<i64: 1, 128>}, {transform_indices = @transform_5, window_bounds = array<i64: 128, 128>}, {transform_indices = @transform_6, window_bounds = array<i64: 128, 128>}]} {
    %c0_i32 = arith.constant 0 : i32
    %0 = arith.cmpi eq, %arg1, %c0_i32 : i32
    %1 = arith.extui %0 : i1 to i32
    %c0_i32_0 = arith.constant 0 : i32
    %2 = arith.cmpi ne, %1, %c0_i32_0 : i32
    scf.if %2 {
      %cst_14 = arith.constant 0.000000e+00 : f32
      %22 = vector.broadcast %cst_14 : f32 to vector<128x128xf32>
      %c0_15 = arith.constant 0 : index
      %c0_16 = arith.constant 0 : index
      %23 = vector.load %arg9[%c0_15, %c0_16] : memref<128x128xf32, #tpu.memory_space<vmem>>, vector<128x128xf32>
      tpu.vector_store %arg9[%c0_15, %c0_16], %22 {strides = array<i32>} : memref<128x128xf32, #tpu.memory_space<vmem>>, vector<128x128xf32>,
      %cst_17 = arith.constant 0.000000e+00 : f32
      %24 = vector.broadcast %cst_17 : f32 to vector<128x1xf32>
      %c0_18 = arith.constant 0 : index
      %c0_19 = arith.constant 0 : index
      %25 = vector.load %arg10[%c0_18, %c0_19] : memref<128x1xf32, #tpu.memory_space<vmem>>, vector<128x1xf32>
      tpu.vector_store %arg10[%c0_18, %c0_19], %24 {strides = array<i32>} : memref<128x1xf32, #tpu.memory_space<vmem>>, vector<128x1xf32>,
      %c128_i32_20 = arith.constant 128 : i32
      %26 = arith.muli %arg0, %c128_i32_20 : i32
      %27 = tpu.assume_multiple %26, 128 : i32
      %28 = arith.index_cast %27 : i32 to index
      %c0_21 = arith.constant 0 : index
      %29 = vector.load %arg3[%28, %c0_21] : memref<128x128xbf16, #tpu.memory_space<vmem>>, vector<128x128xbf16>
      %c0_22 = arith.constant 0 : index
      %c0_23 = arith.constant 0 : index
      %30 = vector.load %arg5[%c0_22, %c0_23] : memref<128x128xbf16, #tpu.memory_space<vmem>>, vector<128x128xbf16>
      %cst_24 = arith.constant dense<0.000000e+00> : vector<128x128xf32>
      %31 = tpu.matmul %29, %30, %cst_24 {dimension_numbers = #tpu.dot_dimension_numbers<[1], [0], [0], [1], [0, 0, 1, 1], [], []>} : vector<128x128xbf16>, vector<128x128xbf16>, vector<128x128xf32> -> vector<128x128xf32>
      %c0_25 = arith.constant 0 : index
      %c0_26 = arith.constant 0 : index
      %32 = vector.load %arg6[%c0_25, %c0_26] : memref<1x128xf32, #tpu.memory_space<vmem>>, vector<1x128xf32>
      %33 = vector.broadcast %32 : vector<1x128xf32> to vector<128x128xf32>
      %34 = arith.addf %31, %33 : vector<128x128xf32>
      %c0_27 = arith.constant 0 : index
      %c0_28 = arith.constant 0 : index
      %35 = vector.load %arg7[%c0_27, %c0_28] : memref<128x128xf32, #tpu.memory_space<vmem>>, vector<128x128xf32>
      tpu.vector_store %arg7[%c0_27, %c0_28], %34 {strides = array<i32>} : memref<128x128xf32, #tpu.memory_space<vmem>>, vector<128x128xf32>,
    } else {
    }
    %c0 = arith.constant 0 : index
    %c0_1 = arith.constant 0 : index
    %3 = vector.load %arg2[%c0, %c0_1] : memref<128x128xi8, #tpu.memory_space<vmem>>, vector<128x128xi8>
    %4 = arith.sitofp %3 : vector<128x128xi8> to vector<128x128xf32>
    %c0_2 = arith.constant 0 : index
    %c0_3 = arith.constant 0 : index
    %5 = vector.load %arg10[%c0_2, %c0_3] : memref<128x1xf32, #tpu.memory_space<vmem>>, vector<128x1xf32>
    %cst = arith.constant dense<0.000000e+00> : vector<128xf32>
    %6 = vector.multi_reduction <add>, %4, %cst [1] : vector<128x128xf32> to vector<128xf32>
    %7 = vector.shape_cast %6 : vector<128xf32> to vector<128x1xf32>
    %8 = arith.addf %5, %7 : vector<128x1xf32>
    %c0_4 = arith.constant 0 : index
    %c0_5 = arith.constant 0 : index
    %9 = vector.load %arg10[%c0_4, %c0_5] : memref<128x1xf32, #tpu.memory_space<vmem>>, vector<128x1xf32>
    tpu.vector_store %arg10[%c0_4, %c0_5], %8 {strides = array<i32>} : memref<128x1xf32, #tpu.memory_space<vmem>>, vector<128x1xf32>,
    %c128_i32 = arith.constant 128 : i32
    %10 = arith.muli %arg1, %c128_i32 : i32
    %11 = tpu.assume_multiple %10, 128 : i32
    %12 = arith.index_cast %11 : i32 to index
    %c0_6 = arith.constant 0 : index
    %13 = vector.load %arg3[%12, %c0_6] : memref<128x128xbf16, #tpu.memory_space<vmem>>, vector<128x128xbf16>
    %c0_7 = arith.constant 0 : index
    %c0_8 = arith.constant 0 : index
    %14 = vector.load %arg9[%c0_7, %c0_8] : memref<128x128xf32, #tpu.memory_space<vmem>>, vector<128x128xf32>
    %15 = arith.truncf %4 : vector<128x128xf32> to vector<128x128xbf16>
    %cst_9 = arith.constant dense<0.000000e+00> : vector<128x128xf32>
    %16 = tpu.matmul %15, %13, %cst_9 {dimension_numbers = #tpu.dot_dimension_numbers<[1], [0], [0], [1], [0, 0, 1, 1], [], []>} : vector<128x128xbf16>, vector<128x128xbf16>, vector<128x128xf32> -> vector<128x128xf32>
    %17 = arith.addf %14, %16 : vector<128x128xf32>
    %c0_10 = arith.constant 0 : index
    %c0_11 = arith.constant 0 : index
    %18 = vector.load %arg9[%c0_10, %c0_11] : memref<128x128xf32, #tpu.memory_space<vmem>>, vector<128x128xf32>
    tpu.vector_store %arg9[%c0_10, %c0_11], %17 {strides = array<i32>} : memref<128x128xf32, #tpu.memory_space<vmem>>, vector<128x128xf32>,
    %c0_i32_12 = arith.constant 0 : i32
    %19 = arith.cmpi eq, %arg1, %c0_i32_12 : i32
    %20 = arith.extui %19 : i1 to i32
    %c0_i32_13 = arith.constant 0 : i32
    %21 = arith.cmpi ne, %20, %c0_i32_13 : i32
    scf.if %21 {
      %c0_14 = arith.constant 0 : index
      %c0_15 = arith.constant 0 : index
      %22 = vector.load %arg10[%c0_14, %c0_15] : memref<128x1xf32, #tpu.memory_space<vmem>>, vector<128x1xf32>
      %cst_16 = arith.constant 0.000000e+00 : f32
      %23 = vector.broadcast %cst_16 : f32 to vector<128x1xf32>
      %24 = arith.cmpf ogt, %22, %23 : vector<128x1xf32>
      %cst_17 = arith.constant 1.000000e+00 : f32
      %25 = vector.broadcast %cst_17 : f32 to vector<128x1xf32>
      %26 = arith.divf %25, %22 : vector<128x1xf32>
      %cst_18 = arith.constant 0.000000e+00 : f32
      %27 = vector.broadcast %cst_18 : f32 to vector<128x1xf32>
      %28 = arith.select %24, %26, %27 : vector<128x1xi1>, vector<128x1xf32>
      %c0_19 = arith.constant 0 : index
      %c0_20 = arith.constant 0 : index
      %29 = vector.load %arg9[%c0_19, %c0_20] : memref<128x128xf32, #tpu.memory_space<vmem>>, vector<128x128xf32>
      %30 = vector.broadcast %28 : vector<128x1xf32> to vector<128x128xf32>
      %31 = arith.mulf %29, %30 : vector<128x128xf32>
      %32 = arith.truncf %31 : vector<128x128xf32> to vector<128x128xbf16>
      %c0_21 = arith.constant 0 : index
      %c0_22 = arith.constant 0 : index
      %33 = vector.load %arg7[%c0_21, %c0_22] : memref<128x128xf32, #tpu.memory_space<vmem>>, vector<128x128xf32>
      %c0_23 = arith.constant 0 : index
      %c0_24 = arith.constant 0 : index
      %34 = vector.load %arg4[%c0_23, %c0_24] : memref<128x128xbf16, #tpu.memory_space<vmem>>, vector<128x128xbf16>
      %cst_25 = arith.constant dense<0.000000e+00> : vector<128x128xf32>
      %35 = tpu.matmul %32, %34, %cst_25 {dimension_numbers = #tpu.dot_dimension_numbers<[1], [0], [0], [1], [0, 0, 1, 1], [], []>} : vector<128x128xbf16>, vector<128x128xbf16>, vector<128x128xf32> -> vector<128x128xf32>
      %36 = arith.addf %33, %35 : vector<128x128xf32>
      %c0_26 = arith.constant 0 : index
      %c0_27 = arith.constant 0 : index
      %37 = vector.load %arg7[%c0_26, %c0_27] : memref<128x128xf32, #tpu.memory_space<vmem>>, vector<128x128xf32>
      tpu.vector_store %arg7[%c0_26, %c0_27], %36 {strides = array<i32>} : memref<128x128xf32, #tpu.memory_space<vmem>>, vector<128x128xf32>,
      %cst_28 = arith.constant 0.000000e+00 : f32
      %38 = vector.broadcast %cst_28 : f32 to vector<128x128xf32>
      %39 = arith.maximumf %36, %38 : vector<128x128xf32>
      %40 = arith.truncf %39 : vector<128x128xf32> to vector<128x128xbf16>
      %c0_29 = arith.constant 0 : index
      %c0_30 = arith.constant 0 : index
      %41 = vector.load %arg8[%c0_29, %c0_30] : memref<128x128xbf16, #tpu.memory_space<vmem>>, vector<128x128xbf16>
      tpu.vector_store %arg8[%c0_29, %c0_30], %40 {strides = array<i32>} : memref<128x128xbf16, #tpu.memory_space<vmem>>, vector<128x128xbf16>,
    } else {
    }
    return
  }
  func.func @transform_0(%arg0: i32, %arg1: i32) -> (i32, i32) {
    %c0_i32 = arith.constant 0 : i32
    return %arg0, %arg1 : i32, i32
  }
  func.func @transform_1(%arg0: i32, %arg1: i32) -> (i32, i32) {
    %c0_i32 = arith.constant 0 : i32
    %c0_i32_0 = arith.constant 0 : i32
    %c0_i32_1 = arith.constant 0 : i32
    return %c0_i32, %c0_i32_0 : i32, i32
  }
  func.func @transform_2(%arg0: i32, %arg1: i32) -> (i32, i32) {
    %c0_i32 = arith.constant 0 : i32
    %c0_i32_0 = arith.constant 0 : i32
    %c0_i32_1 = arith.constant 0 : i32
    return %c0_i32, %c0_i32_0 : i32, i32
  }
  func.func @transform_3(%arg0: i32, %arg1: i32) -> (i32, i32) {
    %c0_i32 = arith.constant 0 : i32
    %c0_i32_0 = arith.constant 0 : i32
    %c0_i32_1 = arith.constant 0 : i32
    return %c0_i32, %c0_i32_0 : i32, i32
  }
  func.func @transform_4(%arg0: i32, %arg1: i32) -> (i32, i32) {
    %c0_i32 = arith.constant 0 : i32
    %c0_i32_0 = arith.constant 0 : i32
    %c0_i32_1 = arith.constant 0 : i32
    return %c0_i32, %c0_i32_0 : i32, i32
  }
  func.func @transform_5(%arg0: i32, %arg1: i32) -> (i32, i32) {
    %c0_i32 = arith.constant 0 : i32
    %c0_i32_0 = arith.constant 0 : i32
    return %arg0, %c0_i32 : i32, i32
  }
  func.func @transform_6(%arg0: i32, %arg1: i32) -> (i32, i32) {
    %c0_i32 = arith.constant 0 : i32
    %c0_i32_0 = arith.constant 0 : i32
    return %arg0, %c0_i32 : i32, i32
  }
}

</mosaic_0001>

<bundles_post_ra>
// kernel: _forward_padded.3
= control target key start
LH: loop header
LB: loop body
LE: loop exit
PB: predicated region body
PF: predicated region fallthrough
CT: control target
= control target key end

     0   :  { %vm43_vm0 = vcmask 7168   ;;  %v1512_v2 = vmov 0.0   ;;  %v1513_v48 = vmov 0   ;;  %s1840_s0 = inlined_call_operand.vmem [shape: s8[128,128], index: 0, kind: input, shape index: {}]   ;;  %s1841_s1 = inlined_call_operand.vmem [shape: bf16[128,128], index: 1, kind: input, shape index: {}]   ;;  %s1842_s3 = inlined_call_operand.vmem [shape: bf16[128,128], index: 3, kind: input, shape index: {}]   ;;  %s1843_s2 = inlined_call_operand.vmem [shape: bf16[128,128], index: 2, kind: input, shape index: {}]   ;;  %s1844_s4 = inlined_call_operand.vmem [shape: f32[1,128], index: 4, kind: input, shape index: {}]   ;;  %s1845_s5 = inlined_call_operand.vmem [shape: f32[128,128], index: 5, kind: output, shape index: {0}]   ;;  %s1846_s6 = inlined_call_operand.vmem [shape: bf16[128,128], index: 6, kind: output, shape index: {1}]  }
   0x1   :  { %v1552_v0 = vld [vmem:[%s1840_s0 + $0x10] sm:$0xff]  ;;  %v1557_v1 = vld [vmem:[%s1840_s0] sm:$0xff]  ;;  %52 = vst.msk [vmem:[#allocation3 + $0x40] sm:$0xff] %vm43_vm0, %v1512_v2  ;;  %44 = vst.msk [vmem:[#allocation3] sm:$0xff] %vm43_vm0, %v1512_v2  ;;  %1446 = vset.pattern.permute.xlu0 %v1513_v48  ;;  %1447 = vset.pattern.permute.xlu1 %v1513_v48 }
   0x2   :  { %45 = vst.msk [vmem:[#allocation3 + $0x8] sm:$0xff] %vm43_vm0, %v1512_v2  ;;  %46 = vst.msk [vmem:[#allocation3 + $0x10] sm:$0xff] %vm43_vm0, %v1512_v2  ;;  %v325_v3 = vunpack.c.0.s8 %v1552_v0  ;;  %v317_v4 = vunpack.c.0.s8 %v1557_v1  ;;  %v326_v5 = vunpack.c.1.s8 %v1552_v0  ;;  %v318_v6 = vunpack.c.1.s8 %v1557_v1  ;;  %v1448_v7 = vld [vmem:[%s1841_s1 + $0x38] sm:$0xff]   ;;  %v1449_v10 = vld [vmem:[%s1841_s1 + $0x30] sm:$0xff]  }
   0x3   :  { %47 = vst.msk [vmem:[#allocation3 + $0x18] sm:$0xff] %vm43_vm0, %v1512_v2  ;;  %48 = vst.msk [vmem:[#allocation3 + $0x20] sm:$0xff] %vm43_vm0, %v1512_v2  ;;  %1364 = vmatprep.subr.bf16.mxu1 %v1448_v7  ;;  %v320_v13 = vunpack.c.3.s8 %v1557_v1  ;;  %v319_v14 = vunpack.c.2.s8 %v1557_v1  ;;  %v1450_v15 = vld [vmem:[%s1841_s1 + $0x28] sm:$0xff]   ;;  %v328_v16 = vunpack.c.3.s8 %v1552_v0  ;;  %v327_v19 = vunpack.c.2.s8 %v1552_v0  ;;  %v1451_v21 = vld [vmem:[%s1841_s1 + $0x20] sm:$0xff]  }
   0x4   :  { %49 = vst.msk [vmem:[#allocation3 + $0x28] sm:$0xff] %vm43_vm0, %v1512_v2  ;;  %50 = vst.msk [vmem:[#allocation3 + $0x30] sm:$0xff] %vm43_vm0, %v1512_v2  ;;  %v341_v8 = vcvt.s32.f32 %v325_v3  ;;  %v333_v9 = vcvt.s32.f32 %v317_v4  ;;  %v342_v11 = vcvt.s32.f32 %v326_v5  ;;  %v334_v12 = vcvt.s32.f32 %v318_v6  ;;  %1365 = vmatpush3.bf16.msra.mxu1 %v1448_v7  ;;  %v314_v20 = vld [vmem:[%s1840_s0 + $0x8] sm:$0xff]  ;;  %v316_v27 = vld [vmem:[%s1840_s0 + $0x18] sm:$0xff] }
   0x5   :  { %51 = vst.msk [vmem:[#allocation3 + $0x38] sm:$0xff] %vm43_vm0, %v1512_v2  ;;  %53 = vst.msk [vmem:[#allocation3 + $0x48] sm:$0xff] %vm43_vm0, %v1512_v2  ;;  %1366 = vmatprep.subr.bf16.mxu1 %v1449_v10  ;;  %v336_v17 = vcvt.s32.f32 %v320_v13  ;;  %v335_v18 = vcvt.s32.f32 %v319_v14  ;;  %v467_v22 = vunpack.c.l.s8.bf16 %v1557_v1  ;;  %v344_v23 = vcvt.s32.f32 %v328_v16  ;;  %v1452_v28 = vld [vmem:[%s1841_s1 + $0x18] sm:$0xff]   ;;  %v1453_v33 = vld [vmem:[%s1841_s1 + $0x10] sm:$0xff]  }
   0x6   :  { %54 = vst.msk [vmem:[#allocation3 + $0x50] sm:$0xff] %vm43_vm0, %v1512_v2  ;;  %55 = vst.msk [vmem:[#allocation3 + $0x58] sm:$0xff] %vm43_vm0, %v1512_v2  ;;  %381 = vadd.xlane.f32.xlu1 %v341_v8  ;;  %365 = vadd.xlane.f32.xlu0 %v333_v9  ;;  %v343_v24 = vcvt.s32.f32 %v327_v19  ;;  %v322_v25 = vunpack.c.1.s8 %v314_v20  ;;  %v321_v26 = vunpack.c.0.s8 %v314_v20  ;;  %v330_v31 = vunpack.c.1.s8 %v316_v27  ;;  %v1454_v38 = vld [vmem:[%s1841_s1 + $0x8] sm:$0xff]   ;;  %v1455_v43 = vld [vmem:[%s1841_s1] sm:$0xff]  }
   0x7   :  { %56 = vst.msk [vmem:[#allocation3 + $0x60] sm:$0xff] %vm43_vm0, %v1512_v2  ;;  %57 = vst.msk [vmem:[#allocation3 + $0x68] sm:$0xff] %vm43_vm0, %v1512_v2  ;;  %1380 = vmatprep.mubr.bf16.mxu1 %v467_v22  ;;  %v329_v32 = vunpack.c.0.s8 %v316_v27  ;;  %v324_v36 = vunpack.c.3.s8 %v314_v20  ;;  %v323_v37 = vunpack.c.2.s8 %v314_v20  ;;  %v332_v41 = vunpack.c.3.s8 %v316_v27  ;;  %v1464_v54 = vld [vmem:[%s1841_s1] sm:$0xff]   ;;  %v1456_v55 = vld [vmem:[%s1842_s3 + $0x38] sm:$0xff]  }
   0x8   :  { %58 = vst.msk [vmem:[#allocation3 + $0x70] sm:$0xff] %vm43_vm0, %v1512_v2  ;;  %59 = vst.msk [vmem:[#allocation3 + $0x78] sm:$0xff] %vm43_vm0, %v1512_v2  ;;  %1367 = vmatpush3.bf16.msra.mxu1 %v1449_v10  ;;  %v338_v29 = vcvt.s32.f32 %v322_v25  ;;  %v337_v30 = vcvt.s32.f32 %v321_v26  ;;  %v346_v34 = vcvt.s32.f32 %v330_v31  ;;  %v331_v42 = vunpack.c.2.s8 %v316_v27  ;;  %v1457_v56 = vld [vmem:[%s1842_s3 + $0x30] sm:$0xff]   ;;  %1348 = vmatprep.mubr.bf16.mxu0 %v1464_v54  ;;  %v1458_v57 = vld [vmem:[%s1842_s3 + $0x28] sm:$0xff]  }
   0x9   :  { %1368 = vmatprep.subr.bf16.mxu1 %v1450_v15  ;;  %v345_v35 = vcvt.s32.f32 %v329_v32  ;;  %v340_v39 = vcvt.s32.f32 %v324_v36  ;;  %v339_v40 = vcvt.s32.f32 %v323_v37  ;;  %v348_v44 = vcvt.s32.f32 %v332_v41  ;;  %1332 = vmatprep.subr.bf16.mxu0 %v1456_v55  ;;  %v1459_v58 = vld [vmem:[%s1842_s3 + $0x20] sm:$0xff]   ;;  %v1460_v59 = vld [vmem:[%s1842_s3 + $0x18] sm:$0xff]   ;;  %v1461_v60 = vld [vmem:[%s1842_s3 + $0x10] sm:$0xff]  }
   0xa   :  { %383 = vadd.xlane.f32.xlu1 %v342_v11  ;;  %367 = vadd.xlane.f32.xlu0 %v334_v12  ;;  %v347_v45 = vcvt.s32.f32 %v331_v42  ;;  %v468_v46 = vunpack.c.h.s8.bf16 %v1557_v1  ;;  %v469_v47 = vunpack.c.l.s8.bf16 %v314_v20  ;;  %v470_v49 = vunpack.c.h.s8.bf16 %v314_v20  ;;  %v1462_v61 = vld [vmem:[%s1842_s3 + $0x8] sm:$0xff]   ;;  %v1468_v62 = vld [vmem:[%s1843_s2 + $0x38] sm:$0xff]   ;;  %v1469_v63 = vld [vmem:[%s1843_s2 + $0x30] sm:$0xff]  }
   0xb   :  { %v471_v50 = vunpack.c.l.s8.bf16 %v1552_v0  ;;  %v472_v51 = vunpack.c.h.s8.bf16 %v1552_v0  ;;  %v473_v52 = vunpack.c.l.s8.bf16 %v316_v27  ;;  %v474_v53 = vunpack.c.h.s8.bf16 %v316_v27  ;;  %1333 = vmatpush3.bf16.msra.mxu0 %v1456_v55  ;;  %v1463_v0 = vld [vmem:[%s1842_s3] sm:$0xff]   ;;  %v1465_v1 = vld [vmem:[%s1841_s1 + $0x8] sm:$0xff]   ;;  %v1466_v2 = vld [vmem:[%s1841_s1 + $0x10] sm:$0xff]  }
   0xc   :  { %1369 = vmatpush3.bf16.msra.mxu1 %v1450_v15  ;;  %1334 = vmatprep.subr.bf16.mxu0 %v1457_v56  ;;  %v1467_v3 = vld [vmem:[%s1841_s1 + $0x18] sm:$0xff]   ;;  %v1470_v4 = vld [vmem:[%s1841_s1 + $0x20] sm:$0xff]   ;;  %v1471_v5 = vld [vmem:[%s1841_s1 + $0x28] sm:$0xff]  }
   0xd   :  { %1370 = vmatprep.subr.bf16.mxu1 %v1451_v21  ;;  %v357_v6 = vld [vmem:[#allocation3 + $0x40] sm:$0xff]  ;;  %v358_v12 = vld [vmem:[#allocation3 + $0x48] sm:$0xff]  ;;  %v351_v19 = vld [vmem:[#allocation3 + $0x10] sm:$0xff] }
   0xe   :  { %371 = vadd.xlane.f32.xlu1 %v336_v17  ;;  %369 = vadd.xlane.f32.xlu0 %v335_v18  ;;  %v349_v7 = vld [vmem:[#allocation3] sm:$0xff]  ;;  %v350_v13 = vld [vmem:[#allocation3 + $0x8] sm:$0xff]  ;;  %v352_v18 = vld [vmem:[#allocation3 + $0x18] sm:$0xff] }
   0xf   :  { %1335 = vmatpush3.bf16.msra.mxu0 %v1457_v56  ;;  %v359_v25 = vld [vmem:[#allocation3 + $0x50] sm:$0xff]  ;;  %v354_v31 = vld [vmem:[#allocation3 + $0x28] sm:$0xff]  ;;  %v353_v32 = vld [vmem:[#allocation3 + $0x20] sm:$0xff] }
  0x10   :  { %1371 = vmatpush3.bf16.msra.mxu1 %v1451_v21  ;;  %1336 = vmatprep.subr.bf16.mxu0 %v1458_v57  ;;  %v355_v48 = vld [vmem:[#allocation3 + $0x30] sm:$0xff]  ;;  %v364_v56 = vld [vmem:[#allocation3 + $0x78] sm:$0xff] }
  0x11   :  { %1372 = vmatprep.subr.bf16.mxu1 %v1452_v28 }
  0x12   :  { %387 = vadd.xlane.f32.xlu1 %v344_v23  ;;  %385 = vadd.xlane.f32.xlu0 %v343_v24  ;;  %v360_v24 = vld [vmem:[#allocation3 + $0x58] sm:$0xff] }
  0x13   :  { %1337 = vmatpush3.bf16.msra.mxu0 %v1458_v57  ;;  %v1473_v57 = vld [vmem:[%s1843_s2 + $0x20] sm:$0xff]  }
  0x14   :  { %1373 = vmatpush3.bf16.msra.mxu1 %v1452_v28  ;;  %1338 = vmatprep.subr.bf16.mxu0 %v1459_v58 }
  0x15   :  { %1374 = vmatprep.subr.bf16.mxu1 %v1453_v33 }
  0x16   :  { %375 = vadd.xlane.f32.xlu1 %v338_v29  ;;  %373 = vadd.xlane.f32.xlu0 %v337_v30 }
  0x17   :  { %1339 = vmatpush3.bf16.msra.mxu0 %v1459_v58  ;;  %v363_v58 = vld [vmem:[#allocation3 + $0x70] sm:$0xff] }
  0x18   :  { %1375 = vmatpush3.bf16.msra.mxu1 %v1453_v33  ;;  %1340 = vmatprep.subr.bf16.mxu0 %v1460_v59 }
  0x19   :  { %1376 = vmatprep.subr.bf16.mxu1 %v1454_v38 }
  0x1a   :  { %391 = vadd.xlane.f32.xlu1 %v346_v34  ;;  %389 = vadd.xlane.f32.xlu0 %v345_v35 }
  0x1b   :  { %1341 = vmatpush3.bf16.msra.mxu0 %v1460_v59 }
  0x1c   :  { %1377 = vmatpush3.bf16.msra.mxu1 %v1454_v38  ;;  %1342 = vmatprep.subr.bf16.mxu0 %v1461_v60 }
  0x1d   :  { %1378 = vmatprep.subr.bf16.mxu1 %v1455_v43 }
  0x1e   :  { %379 = vadd.xlane.f32.xlu1 %v340_v39  ;;  %377 = vadd.xlane.f32.xlu0 %v339_v40  ;;  %v362_v39 = vld [vmem:[#allocation3 + $0x68] sm:$0xff]  ;;  %v361_v40 = vld [vmem:[#allocation3 + $0x60] sm:$0xff] }
  0x1f   :  { %1343 = vmatpush3.bf16.msra.mxu0 %v1461_v60 }
  0x20   :  { %1379 = vmatpush3.bf16.msra.mxu1 %v1455_v43  ;;  %1344 = vmatprep.subr.bf16.mxu0 %v1462_v61 }
  0x21   :  { %1428 = vmatprep.subr.bf16.mxu1 %v1468_v62 }
  0x22   :  { %395 = vadd.xlane.f32.xlu1 %v348_v44  ;;  %393 = vadd.xlane.f32.xlu0 %v347_v45 }
  0x23   :  { %1381 = vmatmul.mubr.bf16.vlgmr.msra.gmra.mxu1 %v468_v46  ;;  %1345 = vmatpush3.bf16.msra.mxu0 %v1462_v61  ;;  %v1472_v46 = vld [vmem:[%s1843_s2 + $0x28] sm:$0xff]   ;;  %v1474_v61 = vld [vmem:[%s1841_s1 + $0x30] sm:$0xff]  }
  0x24   :  { %1384 = vmatprep.mubr.bf16.mxu1 %v469_v47  ;;  %1436 = vmatpush3.bf16.msra.mxu1 %v1468_v62  ;;  %v356_v47 = vld [vmem:[#allocation3 + $0x38] sm:$0xff] }
  0x25   :  { %1429 = vmatprep.subr.bf16.mxu1 %v1469_v63  ;;  %1346 = vmatprep.subr.bf16.mxu0 %v1463_v0 }
  0x27   :  { %1347 = vmatpush3.bf16.msra.mxu0 %v1463_v0 }
  0x28   :  { %1437 = vmatpush3.bf16.msra.mxu1 %v1469_v63  ;;  %1396 = vmatprep.subr.bf16.mxu0 %v1468_v62 }
  0x29   :  { %1430 = vmatprep.subr.bf16.mxu1 %v1472_v46 }
  0x2a   :  { %1349 = vmatmul.mubr.bf16.vlgmr.msra.gmra.mxu0 %v1465_v1  ;;  %v1475_v1 = vld [vmem:[%s1841_s1 + $0x38] sm:$0xff]  }
  0x2b   :  { %1385 = vmatmul.mubr.bf16.gmra.mxu1 %v470_v49  ;;  %1352 = vmatprep.mubr.bf16.mxu0 %v1466_v2 }
  0x2c   :  { %1388 = vmatprep.mubr.bf16.mxu1 %v471_v50  ;;  %1397 = vmatpush3.bf16.msra.mxu0 %v1468_v62 }
  0x2d   :  { %1398 = vmatprep.subr.bf16.mxu0 %v1469_v63  ;;  %1438 = vmatpush3.bf16.msra.mxu1 %v1472_v46 }
  0x2e   :  { %1431 = vmatprep.subr.bf16.mxu1 %v1473_v57 }
  0x30   :  { %1399 = vmatpush3.bf16.msra.mxu0 %v1469_v63 }
  0x31   :  { %1400 = vmatprep.subr.bf16.mxu0 %v1472_v46  ;;  %1439 = vmatpush3.bf16.msra.mxu1 %v1473_v57 }
  0x32   :  { %1353 = vmatmul.mubr.bf16.gmra.mxu0 %v1467_v3 }
  0x33   :  { %1389 = vmatmul.mubr.bf16.gmra.mxu1 %v472_v51  ;;  %1356 = vmatprep.mubr.bf16.mxu0 %v1470_v4 }
  0x34   :  { %1392 = vmatprep.mubr.bf16.mxu1 %v473_v52  ;;  %1401 = vmatpush3.bf16.msra.mxu0 %v1472_v46 }
  0x35   :  { %1402 = vmatprep.subr.bf16.mxu0 %v1473_v57 }
  0x38   :  { %1403 = vmatpush3.bf16.msra.mxu0 %v1473_v57 }
  0x3a   :  { %1357 = vmatmul.mubr.bf16.gmra.mxu0 %v1471_v5  ;;  %v1476_v5 = vld [vmem:[%s1843_s2 + $0x18] sm:$0xff]  }
  0x3b   :  { %1393 = vmatmul.mubr.bf16.gmra.mxu1 %v474_v53  ;;  %1360 = vmatprep.mubr.bf16.mxu0 %v1474_v61 }
  0x3c   :  { %1404 = vmatprep.subr.bf16.mxu0 %v1476_v5  ;;  %1432 = vmatprep.subr.bf16.mxu1 %v1476_v5 }
  0x3d   :  { %1405 = vmatpush3.bf16.msra.mxu0 %v1476_v5  ;;  %1440 = vmatpush3.bf16.msra.mxu1 %v1476_v5 }
  0x42   :  { %1361 = vmatmul.mubr.bf16.gmra.mxu0 %v1475_v1 }
  0x8f   :  { %v382_v8 = vpop.xlane.xlu1 %381  ;;  %v366_v9 = vpop.xlane.xlu0 %365 }
  0x90   :  { %v405_v10 = vadd.f32 %v382_v8, %v357_v6  ;;  %v397_v11 = vadd.f32 %v366_v9, %v349_v7 }
  0x92   :  { %422 = vst.msk [vmem:[#allocation3 + $0x40] sm:$0xff] %vm43_vm0, %v405_v10  ;;  %414 = vst.msk [vmem:[#allocation3] sm:$0xff] %vm43_vm0, %v397_v11  ;;  %v1477_v10 = vld [vmem:[%s1843_s2 + $0x10] sm:$0xff]  }
  0x93   :  { %v384_v14 = vpop.xlane.xlu1 %383  ;;  %v368_v15 = vpop.xlane.xlu0 %367  ;;  %1406 = vmatprep.subr.bf16.mxu0 %v1477_v10  ;;  %1433 = vmatprep.subr.bf16.mxu1 %v1477_v10 }
  0x94   :  { %v406_v16 = vadd.f32 %v384_v14, %v358_v12  ;;  %v398_v17 = vadd.f32 %v368_v15, %v350_v13  ;;  %1407 = vmatpush3.bf16.msra.mxu0 %v1477_v10  ;;  %1441 = vmatpush3.bf16.msra.mxu1 %v1477_v10  ;;  %v1478_v15 = vld [vmem:[%s1843_s2 + $0x8] sm:$0xff]  }
  0x95   :  { %1408 = vmatprep.subr.bf16.mxu0 %v1478_v15  ;;  %1434 = vmatprep.subr.bf16.mxu1 %v1478_v15 }
  0x96   :  { %423 = vst.msk [vmem:[#allocation3 + $0x48] sm:$0xff] %vm43_vm0, %v406_v16  ;;  %415 = vst.msk [vmem:[#allocation3 + $0x8] sm:$0xff] %vm43_vm0, %v398_v17 }
  0x97   :  { %v372_v20 = vpop.xlane.xlu1 %371  ;;  %v370_v21 = vpop.xlane.xlu0 %369 }
  0x98   :  { %v400_v22 = vadd.f32 %v372_v20, %v352_v18  ;;  %v399_v23 = vadd.f32 %v370_v21, %v351_v19  ;;  %1409 = vmatpush3.bf16.msra.mxu0 %v1478_v15  ;;  %1442 = vmatpush3.bf16.msra.mxu1 %v1478_v15 }
  0x99   :  { %v655_v26 = vld [vmem:[#allocation3] sm:$0xff] }
  0x9a   :  { %417 = vst.msk [vmem:[#allocation3 + $0x18] sm:$0xff] %vm43_vm0, %v400_v22  ;;  %416 = vst.msk [vmem:[#allocation3 + $0x10] sm:$0xff] %vm43_vm0, %v399_v23  ;;  %1480 = vrcp.f32 %v655_v26  ;;  %v1671_v34 = vld [vmem:[#allocation3 + $0x40] sm:$0xff]  ;;  %vm671_vm1 = vcmp.gt.f32.partialorder %v655_v26, 0.0 }
  0x9b   :  { %v388_v27 = vpop.xlane.xlu1 %387  ;;  %v386_v28 = vpop.xlane.xlu0 %385  ;;  %vm679_vm3 = vcmp.gt.f32.partialorder %v1671_v34, 0.0  ;;  %v1479_v22 = vld [vmem:[%s1843_s2] sm:$0xff]  }
  0x9c   :  { %v408_v29 = vadd.f32 %v388_v27, %v360_v24  ;;  %v407_v30 = vadd.f32 %v386_v28, %v359_v25  ;;  %1410 = vmatprep.subr.bf16.mxu0 %v1479_v22  ;;  %1435 = vmatprep.subr.bf16.mxu1 %v1479_v22 }
  0x9d   :  { %v656_v33 = vld [vmem:[#allocation3 + $0x8] sm:$0xff]  ;;  %1411 = vmatpush3.bf16.msra.mxu0 %v1479_v22  ;;  %1443 = vmatpush3.bf16.msra.mxu1 %v1479_v22 }
  0x9e   :  { %425 = vst.msk [vmem:[#allocation3 + $0x58] sm:$0xff] %vm43_vm0, %v408_v29  ;;  %424 = vst.msk [vmem:[#allocation3 + $0x50] sm:$0xff] %vm43_vm0, %v407_v30  ;;  %1482 = vrcp.f32 %v656_v33  ;;  %v1676_v41 = vld [vmem:[#allocation3 + $0x48] sm:$0xff]  ;;  %vm672_vm2 = vcmp.gt.f32.partialorder %v656_v33, 0.0 }
  0x9f   :  { %v376_v35 = vpop.xlane.xlu1 %375  ;;  %v374_v36 = vpop.xlane.xlu0 %373  ;;  %1484 = vrcp.f32 %v1671_v34  ;;  %vm680_vm4 = vcmp.gt.f32.partialorder %v1676_v41, 0.0 }
  0xa0   :  { %v402_v37 = vadd.f32 %v376_v35, %v354_v31  ;;  %v401_v38 = vadd.f32 %v374_v36, %v353_v32  ;;  %1486 = vrcp.f32 %v1676_v41 }
  0xa1   :  { %v1684_v49 = vld [vmem:[#allocation3 + $0x10] sm:$0xff]  ;;  %v1694_v60 = vld [vmem:[#allocation3 + $0x18] sm:$0xff] }
  0xa2   :  { %419 = vst.msk [vmem:[#allocation3 + $0x28] sm:$0xff] %vm43_vm0, %v402_v37  ;;  %418 = vst.msk [vmem:[#allocation3 + $0x20] sm:$0xff] %vm43_vm0, %v401_v38  ;;  %1488 = vrcp.f32 %v1684_v49  ;;  %vm673_vm6 = vcmp.gt.f32.partialorder %v1684_v49, 0.0  ;;  %vm674_vm8 = vcmp.gt.f32.partialorder %v1694_v60, 0.0 }
  0xa3   :  { %v392_v42 = vpop.xlane.xlu1 %391  ;;  %v390_v43 = vpop.xlane.xlu0 %389 }
  0xa4   :  { %v410_v44 = vadd.f32 %v392_v42, %v362_v39  ;;  %v409_v45 = vadd.f32 %v390_v43, %v361_v40 }
  0xa5   :  { %v1709_v8 = vld [vmem:[#allocation3 + $0x50] sm:$0xff]  ;;  %v666_v13 = vld [vmem:[#allocation3 + $0x58] sm:$0xff] }
  0xa6   :  { %427 = vst.msk [vmem:[#allocation3 + $0x68] sm:$0xff] %vm43_vm0, %v410_v44  ;;  %426 = vst.msk [vmem:[#allocation3 + $0x60] sm:$0xff] %vm43_vm0, %v409_v45  ;;  %vm681_vm10 = vcmp.gt.f32.partialorder %v1709_v8, 0.0  ;;  %vm682_vm12 = vcmp.gt.f32.partialorder %v666_v13, 0.0 }
  0xa7   :  { %v1481_v50 = vpop.eup %1480  ;;  %v380_v51 = vpop.xlane.xlu1 %379 }
  0xa8   :  { %v378_v52 = vpop.xlane.xlu0 %377  ;;  %v404_v53 = vadd.f32 %v380_v51, %v356_v47  ;;  %v719_v54 = vsel %vm671_vm1, %v1481_v50, 0.0 }
  0xa9   :  { %v403_v55 = vadd.f32 %v378_v52, %v355_v48  ;;  %753 = vperm.xlu0 %1446, %v719_v54   ;;  %v1692_v59 = vld [vmem:[#allocation3 + $0x28] sm:$0xff]  ;;  %v659_v18 = vld [vmem:[#allocation3 + $0x20] sm:$0xff] }
  0xaa   :  { %421 = vst.msk [vmem:[#allocation3 + $0x38] sm:$0xff] %vm43_vm0, %v404_v53  ;;  %1490 = vrcp.f32 %v1692_v59  ;;  %vm676_vm5 = vcmp.gt.f32.partialorder %v1692_v59, 0.0  ;;  %vm675_vm13 = vcmp.gt.f32.partialorder %v659_v18, 0.0 }
  0xab   :  { %420 = vst.msk [vmem:[#allocation3 + $0x30] sm:$0xff] %vm43_vm0, %v403_v55  ;;  %v1483_v62 = vpop.eup %1482  ;;  %v396_v63 = vpop.xlane.xlu1 %395  ;;  %1492 = vrcp.f32 %v1694_v60 }
  0xac   :  { %v394_v0 = vpop.xlane.xlu0 %393  ;;  %v412_v2 = vadd.f32 %v396_v63, %v364_v56  ;;  %v720_v3 = vsel %vm672_vm2, %v1483_v62, 0.0  ;;  %v1485_v6 = vpop.eup %1484 }
  0xad   :  { %v411_v4 = vadd.f32 %v394_v0, %v363_v58  ;;  %758 = vperm.xlu1 %1447, %v720_v3   ;;  %v668_v7 = vld [vmem:[#allocation3 + $0x68] sm:$0xff]  ;;  %v727_v9 = vsel %vm679_vm3, %v1485_v6, 0.0  ;;  %v1487_v11 = vpop.eup %1486  ;;  %v667_v24 = vld [vmem:[#allocation3 + $0x60] sm:$0xff] }
  0xae   :  { %429 = vst.msk [vmem:[#allocation3 + $0x78] sm:$0xff] %vm43_vm0, %v412_v2  ;;  %1494 = vrcp.f32 %v668_v7  ;;  %v728_v14 = vsel %vm680_vm4, %v1487_v11, 0.0  ;;  %vm684_vm7 = vcmp.gt.f32.partialorder %v668_v7, 0.0  ;;  %vm683_vm14 = vcmp.gt.f32.partialorder %v667_v24, 0.0 }
  0xaf   :  { %428 = vst.msk [vmem:[#allocation3 + $0x70] sm:$0xff] %vm43_vm0, %v411_v4  ;;  %1496 = vrcp.f32 %v1709_v8  ;;  %v1489_v16 = vpop.eup %1488 }
  0xb0   :  { %v721_v21 = vsel %vm673_vm6, %v1489_v16, 0.0 }
  0xb1   :  { %793 = vperm.xlu1 %1447, %v727_v9   ;;  %v662_v12 = vld [vmem:[#allocation3 + $0x38] sm:$0xff] }
  0xb2   :  { %1498 = vrcp.f32 %v662_v12  ;;  %vm678_vm9 = vcmp.gt.f32.partialorder %v662_v12, 0.0  ;;  %v661_v29 = vld [vmem:[#allocation3 + $0x30] sm:$0xff] }
  0xb3   :  { %1500 = vrcp.f32 %v666_v13  ;;  %vm677_vm15 = vcmp.gt.f32.partialorder %v661_v29, 0.0 }
  0xb5   :  { %798 = vperm.xlu1 %1447, %v728_v14   ;;  %v670_v17 = vld [vmem:[#allocation3 + $0x78] sm:$0xff] }
  0xb6   :  { %1502 = vrcp.f32 %v670_v17  ;;  %vm686_vm11 = vcmp.gt.f32.partialorder %v670_v17, 0.0  ;;  %v669_v34 = vld [vmem:[#allocation3 + $0x70] sm:$0xff] }
  0xb7   :  { %v1491_v19 = vpop.eup %1490  ;;  %1504 = vrcp.f32 %v659_v18  ;;  %vm685_vm0 = vcmp.gt.f32.partialorder %v669_v34, 0.0 }
  0xb8   :  { %v724_v20 = vsel %vm676_vm5, %v1491_v19, 0.0  ;;  %v1493_v23 = vpop.eup %1492  ;;  %1506 = vrcp.f32 %v667_v24 }
  0xb9   :  { %778 = vperm.xlu0 %1446, %v724_v20   ;;  %763 = vperm.xlu1 %1447, %v721_v21   ;;  %v722_v27 = vsel %vm674_vm8, %v1493_v23, 0.0  ;;  %1508 = vrcp.f32 %v661_v29 }
  0xba   :  { %1510 = vrcp.f32 %v669_v34 }
  0xbb   :  { %v1495_v25 = vpop.eup %1494 }
  0xbc   :  { %v732_v26 = vsel %vm684_vm7, %v1495_v25, 0.0  ;;  %v1497_v28 = vpop.eup %1496 }
  0xbd   :  { %818 = vperm.xlu0 %1446, %v732_v26   ;;  %768 = vperm.xlu1 %1447, %v722_v27   ;;  %v729_v32 = vsel %vm681_vm10, %v1497_v28, 0.0 }
  0xbf   :  { %v1499_v30 = vpop.eup %1498 }
  0xc0   :  { %v726_v31 = vsel %vm678_vm9, %v1499_v30, 0.0  ;;  %v1501_v33 = vpop.eup %1500 }
  0xc1   :  { %788 = vperm.xlu0 %1446, %v726_v31   ;;  %803 = vperm.xlu1 %1447, %v729_v32   ;;  %v730_v37 = vsel %vm682_vm12, %v1501_v33, 0.0 }
  0xc3   :  { %v1503_v35 = vpop.eup %1502 }
  0xc4   :  { %v734_v36 = vsel %vm686_vm11, %v1503_v35, 0.0  ;;  %v1505_v38 = vpop.eup %1504 }
  0xc5   :  { %828 = vperm.xlu0 %1446, %v734_v36   ;;  %808 = vperm.xlu1 %1447, %v730_v37   ;;  %v723_v39 = vsel %vm675_vm13, %v1505_v38, 0.0  ;;  %v1507_v40 = vpop.eup %1506 }
  0xc6   :  { %v731_v41 = vsel %vm683_vm14, %v1507_v40, 0.0  ;;  %v1509_v42 = vpop.eup %1508 }
  0xc7   :  { %v725_v43 = vsel %vm677_vm15, %v1509_v42, 0.0  ;;  %v1511_v44 = vpop.eup %1510 }
  0xc8   :  { %v733_v45 = vsel %vm685_vm0, %v1511_v44, 0.0 }
  0xc9   :  { %773 = vperm.xlu1 %1447, %v723_v39  }
  0xcd   :  { %813 = vperm.xlu1 %1447, %v731_v41  }
  0xd1   :  { %783 = vperm.xlu1 %1447, %v725_v43  }
  0xd5   :  { %823 = vperm.xlu1 %1447, %v733_v45  }
  0xe3   :  { %v1382_v46 = vpop.f32.mrf.mxu1 }
  0xe5   :  { %v557_v47 = vpop.f32.mrf.mxu1 }
  0xe7   :  { %v1383_v48 = vpop.f32.mrf.mxu1 }
  0xe9   :  { %v560_v49 = vpop.f32.mrf.mxu1 }
  0xea   :  { %v1350_v38 = vpop.f32.mrf.mxu0 }
  0xeb   :  { %v1386_v50 = vpop.f32.mrf.mxu1 }
  0xec   :  { %v234_v39 = vpop.f32.mrf.mxu0 }
  0xed   :  { %v573_v51 = vpop.f32.mrf.mxu1 }
  0xee   :  { %v1351_v40 = vpop.f32.mrf.mxu0 }
  0xef   :  { %v1387_v52 = vpop.f32.mrf.mxu1 }
  0xf0   :  { %v237_v41 = vpop.f32.mrf.mxu0 }
  0xf1   :  { %v576_v53 = vpop.f32.mrf.mxu1 }
  0xf2   :  { %v1354_v42 = vpop.f32.mrf.mxu0 }
  0xf3   :  { %v1390_v54 = vpop.f32.mrf.mxu1 }
  0xf4   :  { %v1729_v43 = vpop.f32.mrf.mxu0 }
  0xf5   :  { %v589_v56 = vpop.f32.mrf.mxu1 }
  0xf6   :  { %v1731_v44 = vpop.f32.mrf.mxu0 }
  0xf7   :  { %v1391_v60 = vpop.f32.mrf.mxu1 }
  0xf8   :  { %v1733_v45 = vpop.f32.mrf.mxu0 }
  0xf9   :  { %v592_v63 = vpop.f32.mrf.mxu1 }
  0xfb   :  { %v1394_v8 = vpop.f32.mrf.mxu1 }
  0xfd   :  { %v605_v12 = vpop.f32.mrf.mxu1 }
  0xff   :  { %v1395_v17 = vpop.f32.mrf.mxu1 }
 0x101   :  { %v608_v22 = vpop.f32.mrf.mxu1 }
 0x124   :  { %v754_v55 = vpop.permute.xlu0 %753 }
 0x125   :  { %v831_v58 = vmul.f32 %v754_v55, %v557_v47 }
 0x128   :  { %v759_v57 = vpop.permute.xlu1 %758 }
 0x129   :  { %v832_v59 = vmul.f32 %v759_v57, %v560_v49 }
 0x12b   :  { %v847_v61 = vpack.c.bf16 %v832_v59, %v831_v58 }
 0x12c   :  { %v794_v62 = vpop.permute.xlu1 %793 }
 0x12d   :  { %1412 = vmatprep.mubr.bf16.mxu0 %v847_v61  ;;  %v839_v1 = vmul.f32 %v794_v62, %v589_v56 }
 0x130   :  { %v799_v0 = vpop.permute.xlu1 %798 }
 0x131   :  { %v840_v2 = vmul.f32 %v799_v0, %v592_v63 }
 0x133   :  { %v851_v3 = vpack.c.bf16 %v840_v2, %v839_v1 }
 0x134   :  { %v764_v4 = vpop.permute.xlu1 %763  ;;  %v779_v10 = vpop.permute.xlu0 %778 }
 0x135   :  { %1420 = vmatprep.mubr.bf16.mxu1 %v851_v3  ;;  %v833_v6 = vmul.f32 %v1382_v46, %v764_v4  ;;  %v836_v20 = vmul.f32 %v779_v10, %v576_v53  ;;  %v1358_v46 = vpop.f32.mrf.mxu0  ;;  %v1742_v53 = vld [vmem:[%s1844_s4] ss:$0 sm:$0xff] }
 0x136   :  { %v243_v55 = vadd.f32 %v1350_v38, %v1742_v53  ;;  %v235_v57 = vadd.f32 %v1742_v53, %v234_v39  ;;  %v238_v63 = vadd.f32 %v1742_v53, %v237_v41  ;;  %v275_v2 = vadd.f32 %v1358_v46, %v1742_v53 }
 0x137   :  { %v266_v47 = vpop.f32.mrf.mxu0 }
 0x138   :  { %v769_v5 = vpop.permute.xlu1 %768  ;;  %v819_v16 = vpop.permute.xlu0 %818 }
 0x139   :  { %v834_v7 = vmul.f32 %v1383_v48, %v769_v5  ;;  %v844_v26 = vmul.f32 %v819_v16, %v608_v22  ;;  %v1359_v48 = vpop.f32.mrf.mxu0 }
 0x13b   :  { %v848_v9 = vpack.c.bf16 %v834_v7, %v833_v6  ;;  %v269_v49 = vpop.f32.mrf.mxu0  ;;  %v267_v6 = vadd.f32 %v1742_v53, %v266_v47 }
 0x13c   :  { %v804_v11 = vpop.permute.xlu1 %803  ;;  %v789_v24 = vpop.permute.xlu0 %788 }
 0x13d   :  { %1413 = vmatmul.mubr.bf16.vlgmr.msra.gmra.mxu0 %v848_v9  ;;  %v841_v14 = vmul.f32 %v1390_v54, %v804_v11  ;;  %v838_v30 = vmul.f32 %v1387_v52, %v789_v24 }
 0x140   :  { %v809_v13 = vpop.permute.xlu1 %808  ;;  %v829_v32 = vpop.permute.xlu0 %828 }
 0x141   :  { %v842_v15 = vmul.f32 %v1391_v60, %v809_v13  ;;  %v846_v35 = vmul.f32 %v1395_v17, %v829_v32  ;;  %v246_v60 = vadd.f32 %v1351_v40, %v1742_v53  ;;  %v278_v13 = vadd.f32 %v1359_v48, %v1742_v53 }
 0x142   :  { %v270_v17 = vadd.f32 %v1742_v53, %v269_v49  ;;  %v262_v32 = vadd.f32 %v1731_v44, %v1742_v53 }
 0x143   :  { %v852_v18 = vpack.c.bf16 %v842_v15, %v841_v14 }
 0x144   :  { %v774_v19 = vpop.permute.xlu1 %773 }
 0x145   :  { %v835_v21 = vmul.f32 %v774_v19, %v573_v51  ;;  %1421 = vmatmul.mubr.bf16.vlgmr.msra.gmra.mxu1 %v852_v18 }
 0x147   :  { %v849_v23 = vpack.c.bf16 %v836_v20, %v835_v21 }
 0x148   :  { %v814_v25 = vpop.permute.xlu1 %813 }
 0x149   :  { %v843_v27 = vmul.f32 %v814_v25, %v605_v12  ;;  %1416 = vmatprep.mubr.bf16.mxu0 %v849_v23 }
 0x14b   :  { %v853_v28 = vpack.c.bf16 %v844_v26, %v843_v27  ;;  %v259_v26 = vadd.f32 %v1354_v42, %v1742_v53 }
 0x14c   :  { %v784_v29 = vpop.permute.xlu1 %783 }
 0x14d   :  { %v837_v31 = vmul.f32 %v1386_v50, %v784_v29  ;;  %1424 = vmatprep.mubr.bf16.mxu1 %v853_v28  ;;  %v1362_v50 = vpop.f32.mrf.mxu0  ;;  %v251_v29 = vadd.f32 %v1742_v53, %v1729_v43 }
 0x14f   :  { %v850_v33 = vpack.c.bf16 %v838_v30, %v837_v31  ;;  %v1735_v51 = vpop.f32.mrf.mxu0 }
 0x150   :  { %v824_v34 = vpop.permute.xlu1 %823  ;;  %v283_v38 = vadd.f32 %v1742_v53, %v1735_v51 }
 0x151   :  { %v845_v36 = vmul.f32 %v1394_v8, %v824_v34  ;;  %1417 = vmatmul.mubr.bf16.gmra.mxu0 %v850_v33  ;;  %v1737_v52 = vpop.f32.mrf.mxu0  ;;  %v291_v33 = vadd.f32 %v1362_v50, %v1742_v53 }
 0x152   :  { %v294_v41 = vadd.f32 %v1737_v52, %v1742_v53 }
 0x153   :  { %v854_v37 = vpack.c.bf16 %v846_v35, %v845_v36  ;;  %v1744_v54 = vpop.f32.mrf.mxu0 }
 0x154   :  { %v286_v48 = vadd.f32 %v1742_v53, %v1744_v54 }
 0x155   :  { %1425 = vmatmul.mubr.bf16.gmra.mxu1 %v854_v37  ;;  %v254_v37 = vadd.f32 %v1742_v53, %v1733_v45 }
 0x1fd   :  { %v1414_v56 = vpop.f32.mrf.mxu0 }
 0x1fe   :  { %v1034_v58 = vadd.f32 %v1414_v56, %v243_v55 }
 0x1ff   :  { %v969_v59 = vpop.f32.mrf.mxu0 }
 0x200   :  { %1050 = vst [vmem:[%s1845_s5 + $0x10] sm:$0xff] %v1034_v58  ;;  %v1032_v61 = vadd.f32 %v969_v59, %v235_v57  ;;  %v1066_v3 = vmax.f32 %v1034_v58, 0.0 }
 0x201   :  { %v1415_v62 = vpop.f32.mrf.mxu0 }
 0x202   :  { %1048 = vst [vmem:[%s1845_s5] sm:$0xff] %v1032_v61  ;;  %v1035_v0 = vadd.f32 %v1415_v62, %v246_v60  ;;  %v1064_v8 = vmax.f32 %v1032_v61, 0.0 }
 0x203   :  { %v972_v1 = vpop.f32.mrf.mxu0 }
 0x204   :  { %1051 = vst [vmem:[%s1845_s5 + $0x18] sm:$0xff] %v1035_v0  ;;  %v1067_v4 = vmax.f32 %v1035_v0, 0.0  ;;  %v1033_v5 = vadd.f32 %v972_v1, %v238_v63 }
 0x205   :  { %v1422_v7 = vpop.f32.mrf.mxu1 }
 0x206   :  { %v1245_v9 = vpack.c.bf16 %v1067_v4, %v1066_v3  ;;  %1049 = vst [vmem:[%s1845_s5 + $0x8] sm:$0xff] %v1033_v5  ;;  %v1065_v10 = vmax.f32 %v1033_v5, 0.0  ;;  %v1042_v11 = vadd.f32 %v1422_v7, %v275_v2 }
 0x207   :  { %v1001_v12 = vpop.f32.mrf.mxu1 }
 0x208   :  { %1277 = vst [vmem:[%s1846_s6 + $0x8] sm:$0xff] %v1245_v9   ;;  %v1240_v14 = vpack.c.bf16 %v1065_v10, %v1064_v8  ;;  %1058 = vst [vmem:[%s1845_s5 + $0x50] sm:$0xff] %v1042_v11  ;;  %v1040_v15 = vadd.f32 %v1001_v12, %v267_v6  ;;  %v1074_v20 = vmax.f32 %v1042_v11, 0.0 }
 0x209   :  { %v1423_v16 = vpop.f32.mrf.mxu1 }
 0x20a   :  { %1241 = vst [vmem:[%s1846_s6] sm:$0xff] %v1240_v14   ;;  %1056 = vst [vmem:[%s1845_s5 + $0x40] sm:$0xff] %v1040_v15  ;;  %v1043_v18 = vadd.f32 %v1423_v16, %v278_v13  ;;  %v1072_v23 = vmax.f32 %v1040_v15, 0.0 }
 0x20b   :  { %v1004_v19 = vpop.f32.mrf.mxu1 }
 0x20c   :  { %1059 = vst [vmem:[%s1845_s5 + $0x58] sm:$0xff] %v1043_v18  ;;  %v1075_v21 = vmax.f32 %v1043_v18, 0.0  ;;  %v1041_v22 = vadd.f32 %v1004_v19, %v270_v17 }
 0x20e   :  { %v1265_v24 = vpack.c.bf16 %v1075_v21, %v1074_v20  ;;  %1057 = vst [vmem:[%s1845_s5 + $0x48] sm:$0xff] %v1041_v22  ;;  %v1073_v25 = vmax.f32 %v1041_v22, 0.0 }
 0x210   :  { %1281 = vst [vmem:[%s1846_s6 + $0x28] sm:$0xff] %v1265_v24   ;;  %v1260_v27 = vpack.c.bf16 %v1073_v25, %v1072_v23 }
 0x211   :  { %v1418_v28 = vpop.f32.mrf.mxu0 }
 0x212   :  { %1280 = vst [vmem:[%s1846_s6 + $0x20] sm:$0xff] %v1260_v27   ;;  %v1038_v30 = vadd.f32 %v1418_v28, %v259_v26 }
 0x213   :  { %v985_v31 = vpop.f32.mrf.mxu0 }
 0x214   :  { %1054 = vst [vmem:[%s1845_s5 + $0x30] sm:$0xff] %v1038_v30  ;;  %v1036_v34 = vadd.f32 %v985_v31, %v251_v29  ;;  %v1070_v44 = vmax.f32 %v1038_v30, 0.0 }
 0x215   :  { %v1419_v35 = vpop.f32.mrf.mxu0  ;;  %v1426_v36 = vpop.f32.mrf.mxu1 }
 0x216   :  { %1052 = vst [vmem:[%s1845_s5 + $0x20] sm:$0xff] %v1036_v34  ;;  %v1039_v39 = vadd.f32 %v1419_v35, %v262_v32  ;;  %v1046_v40 = vadd.f32 %v1426_v36, %v291_v33  ;;  %v1068_v50 = vmax.f32 %v1036_v34, 0.0 }
 0x217   :  { %v988_v42 = vpop.f32.mrf.mxu0  ;;  %v1017_v43 = vpop.f32.mrf.mxu1 }
 0x218   :  { %1055 = vst [vmem:[%s1845_s5 + $0x38] sm:$0xff] %v1039_v39  ;;  %v1071_v45 = vmax.f32 %v1039_v39, 0.0  ;;  %1062 = vst [vmem:[%s1845_s5 + $0x70] sm:$0xff] %v1046_v40  ;;  %v1037_v46 = vadd.f32 %v988_v42, %v254_v37  ;;  %v1044_v47 = vadd.f32 %v1017_v43, %v283_v38  ;;  %v1078_v57 = vmax.f32 %v1046_v40, 0.0 }
 0x219   :  { %v1427_v49 = vpop.f32.mrf.mxu1 }
 0x21a   :  { %v1255_v51 = vpack.c.bf16 %v1071_v45, %v1070_v44  ;;  %1053 = vst [vmem:[%s1845_s5 + $0x28] sm:$0xff] %v1037_v46  ;;  %v1069_v52 = vmax.f32 %v1037_v46, 0.0  ;;  %1060 = vst [vmem:[%s1845_s5 + $0x60] sm:$0xff] %v1044_v47  ;;  %v1047_v55 = vadd.f32 %v1427_v49, %v294_v41  ;;  %v1076_v59 = vmax.f32 %v1044_v47, 0.0 }
 0x21b   :  { %v1020_v56 = vpop.f32.mrf.mxu1 }
 0x21c   :  { %1279 = vst [vmem:[%s1846_s6 + $0x18] sm:$0xff] %v1255_v51   ;;  %v1250_v53 = vpack.c.bf16 %v1069_v52, %v1068_v50  ;;  %1063 = vst [vmem:[%s1845_s5 + $0x78] sm:$0xff] %v1047_v55  ;;  %v1079_v54 = vmax.f32 %v1047_v55, 0.0  ;;  %v1045_v58 = vadd.f32 %v1020_v56, %v286_v48 }
 0x21e   :  { %1278 = vst [vmem:[%s1846_s6 + $0x10] sm:$0xff] %v1250_v53   ;;  %v1275_v60 = vpack.c.bf16 %v1079_v54, %v1078_v57  ;;  %1061 = vst [vmem:[%s1845_s5 + $0x68] sm:$0xff] %v1045_v58  ;;  %v1077_v61 = vmax.f32 %v1045_v58, 0.0 }
 0x220   :  { %1283 = vst [vmem:[%s1846_s6 + $0x38] sm:$0xff] %v1275_v60   ;;  %v1270_v62 = vpack.c.bf16 %v1077_v61, %v1076_v59 }
 0x222   :  { %1282 = vst [vmem:[%s1846_s6 + $0x30] sm:$0xff] %v1270_v62  }

// kernel: _forward_padded.5
= control target key start
LH: loop header
LB: loop body
LE: loop exit
PB: predicated region body
PF: predicated region fallthrough
CT: control target
= control target key end

     0   :  { %vm44_vm0 = vcmask 7168   ;;  %v1550_v23 = vmov 0.0   ;;  %s1873_s0 = inlined_call_operand.vmem [shape: s8[128,128], index: 0, kind: input, shape index: {}]   ;;  %s1874_s1 = inlined_call_operand.vmem [shape: bf16[128,128], index: 1, kind: input, shape index: {}]   ;;  %s1875_s2 = inlined_call_operand.vmem [shape: bf16[128,128], index: 2, kind: input, shape index: {}]   ;;  %s1876_s3 = inlined_call_operand.vmem [shape: bf16[128,128], index: 3, kind: input, shape index: {}]   ;;  %s1877_s4 = inlined_call_operand.vmem [shape: f32[1,128], index: 4, kind: input, shape index: {}]   ;;  %s1878_s5 = inlined_call_operand.vmem [shape: f32[128,128], index: 5, kind: output, shape index: {0}]   ;;  %s1879_s6 = inlined_call_operand.hbm [shape: bf16[128,128], index: 6, kind: output, shape index: {1}]  }
   0x1   :  { %v1593_v0 = vld [vmem:[%s1873_s0 + $0x10] sm:$0xff]  ;;  %v1598_v1 = vld [vmem:[%s1873_s0] sm:$0xff]  ;;  %v1464_v6 = vld [vmem:[%s1874_s1 + $0x38] sm:$0xff]   ;;  %53 = vst.msk [vmem:[#allocation3 + $0x40] sm:$0xff] %vm44_vm0, %v1550_v23 }
   0x2   :  { %v326_v2 = vunpack.c.0.s8 %v1593_v0  ;;  %v318_v3 = vunpack.c.0.s8 %v1598_v1  ;;  %v327_v4 = vunpack.c.1.s8 %v1593_v0  ;;  %v319_v5 = vunpack.c.1.s8 %v1598_v1  ;;  %v1465_v9 = vld [vmem:[%s1874_s1 + $0x30] sm:$0xff]   ;;  %1377 = vmatprep.subr.bf16.mxu1 %v1464_v6  ;;  %v1466_v14 = vld [vmem:[%s1874_s1 + $0x28] sm:$0xff]   ;;  %v1467_v20 = vld [vmem:[%s1874_s1 + $0x20] sm:$0xff]   ;;  %45 = vst.msk [vmem:[#allocation3] sm:$0xff] %vm44_vm0, %v1550_v23 }
   0x3   :  { %v321_v12 = vunpack.c.3.s8 %v1598_v1  ;;  %v320_v13 = vunpack.c.2.s8 %v1598_v1  ;;  %1378 = vmatpush3.bf16.msra.mxu1 %v1464_v6  ;;  %v329_v15 = vunpack.c.3.s8 %v1593_v0  ;;  %v1619_v16 = vld [vmem:[%s1873_s0 + $0x8] sm:$0xff]  ;;  %v328_v19 = vunpack.c.2.s8 %v1593_v0  ;;  %v1629_v22 = vld [vmem:[%s1873_s0 + $0x18] sm:$0xff]  ;;  %46 = vst.msk [vmem:[#allocation3 + $0x8] sm:$0xff] %vm44_vm0, %v1550_v23  ;;  %47 = vst.msk [vmem:[#allocation3 + $0x10] sm:$0xff] %vm44_vm0, %v1550_v23 }
   0x4   :  { %v342_v7 = vcvt.s32.f32 %v326_v2  ;;  %v334_v8 = vcvt.s32.f32 %v318_v3  ;;  %v343_v10 = vcvt.s32.f32 %v327_v4  ;;  %v335_v11 = vcvt.s32.f32 %v319_v5  ;;  %1379 = vmatprep.subr.bf16.mxu1 %v1465_v9  ;;  %48 = vst.msk [vmem:[#allocation3 + $0x18] sm:$0xff] %vm44_vm0, %v1550_v23  ;;  %49 = vst.msk [vmem:[#allocation3 + $0x20] sm:$0xff] %vm44_vm0, %v1550_v23  ;;  %v1468_v28 = vld [vmem:[%s1874_s1 + $0x18] sm:$0xff]   ;;  %v1469_v33 = vld [vmem:[%s1874_s1 + $0x10] sm:$0xff]  }
   0x5   :  { %v337_v17 = vcvt.s32.f32 %v321_v12  ;;  %v336_v18 = vcvt.s32.f32 %v320_v13  ;;  %v468_v21 = vunpack.c.l.s8.bf16 %v1598_v1  ;;  %50 = vst.msk [vmem:[#allocation3 + $0x28] sm:$0xff] %vm44_vm0, %v1550_v23  ;;  %51 = vst.msk [vmem:[#allocation3 + $0x30] sm:$0xff] %vm44_vm0, %v1550_v23  ;;  %v345_v24 = vcvt.s32.f32 %v329_v15  ;;  %v1470_v38 = vld [vmem:[%s1874_s1 + $0x8] sm:$0xff]   ;;  %v1471_v43 = vld [vmem:[%s1874_s1] sm:$0xff]  }
   0x6   :  { %382 = vadd.xlane.f32.xlu1 %v342_v7  ;;  %366 = vadd.xlane.f32.xlu0 %v334_v8  ;;  %52 = vst.msk [vmem:[#allocation3 + $0x38] sm:$0xff] %vm44_vm0, %v1550_v23  ;;  %54 = vst.msk [vmem:[#allocation3 + $0x48] sm:$0xff] %vm44_vm0, %v1550_v23  ;;  %v344_v25 = vcvt.s32.f32 %v328_v19  ;;  %v323_v26 = vunpack.c.1.s8 %v1619_v16  ;;  %v322_v27 = vunpack.c.0.s8 %v1619_v16  ;;  %v331_v31 = vunpack.c.1.s8 %v1629_v22 }
   0x7   :  { %1380 = vmatpush3.bf16.msra.mxu1 %v1465_v9  ;;  %1393 = vmatprep.mubr.bf16.mxu1 %v468_v21  ;;  %55 = vst.msk [vmem:[#allocation3 + $0x50] sm:$0xff] %vm44_vm0, %v1550_v23  ;;  %56 = vst.msk [vmem:[#allocation3 + $0x58] sm:$0xff] %vm44_vm0, %v1550_v23  ;;  %v330_v32 = vunpack.c.0.s8 %v1629_v22  ;;  %v325_v36 = vunpack.c.3.s8 %v1619_v16  ;;  %v324_v37 = vunpack.c.2.s8 %v1619_v16  ;;  %v333_v41 = vunpack.c.3.s8 %v1629_v22 }
   0x8   :  { %1381 = vmatprep.subr.bf16.mxu1 %v1466_v14  ;;  %57 = vst.msk [vmem:[#allocation3 + $0x60] sm:$0xff] %vm44_vm0, %v1550_v23  ;;  %58 = vst.msk [vmem:[#allocation3 + $0x68] sm:$0xff] %vm44_vm0, %v1550_v23  ;;  %v339_v29 = vcvt.s32.f32 %v323_v26  ;;  %v338_v30 = vcvt.s32.f32 %v322_v27  ;;  %v347_v34 = vcvt.s32.f32 %v331_v31  ;;  %v332_v42 = vunpack.c.2.s8 %v1629_v22 }
   0x9   :  { %59 = vst.msk [vmem:[#allocation3 + $0x70] sm:$0xff] %vm44_vm0, %v1550_v23  ;;  %60 = vst.msk [vmem:[#allocation3 + $0x78] sm:$0xff] %vm44_vm0, %v1550_v23  ;;  %v346_v35 = vcvt.s32.f32 %v330_v32  ;;  %v341_v39 = vcvt.s32.f32 %v325_v36  ;;  %v340_v40 = vcvt.s32.f32 %v324_v37 }
   0xa   :  { %384 = vadd.xlane.f32.xlu1 %v343_v10  ;;  %368 = vadd.xlane.f32.xlu0 %v335_v11 }
   0xb   :  { %1382 = vmatpush3.bf16.msra.mxu1 %v1466_v14 }
   0xc   :  { %1383 = vmatprep.subr.bf16.mxu1 %v1467_v20 }
   0xe   :  { %372 = vadd.xlane.f32.xlu1 %v337_v17  ;;  %370 = vadd.xlane.f32.xlu0 %v336_v18 }
   0xf   :  { %1384 = vmatpush3.bf16.msra.mxu1 %v1467_v20 }
  0x10   :  { %1385 = vmatprep.subr.bf16.mxu1 %v1468_v28 }
  0x12   :  { %388 = vadd.xlane.f32.xlu1 %v345_v24  ;;  %386 = vadd.xlane.f32.xlu0 %v344_v25 }
  0x13   :  { %1386 = vmatpush3.bf16.msra.mxu1 %v1468_v28 }
  0x14   :  { %1387 = vmatprep.subr.bf16.mxu1 %v1469_v33 }
  0x16   :  { %376 = vadd.xlane.f32.xlu1 %v339_v29  ;;  %374 = vadd.xlane.f32.xlu0 %v338_v30 }
  0x17   :  { %1388 = vmatpush3.bf16.msra.mxu1 %v1469_v33 }
  0x18   :  { %1389 = vmatprep.subr.bf16.mxu1 %v1470_v38 }
  0x1a   :  { %392 = vadd.xlane.f32.xlu1 %v347_v34  ;;  %390 = vadd.xlane.f32.xlu0 %v346_v35 }
  0x1b   :  { %12 = vsyncpa [#allocation5], 0  ;;  %v349_v44 = vcvt.s32.f32 %v333_v41  ;;  %v348_v45 = vcvt.s32.f32 %v332_v42  ;;  %1390 = vmatpush3.bf16.msra.mxu1 %v1470_v38  ;;  %v469_v46 = vunpack.c.h.s8.bf16 %v1598_v1  ;;  %v470_v47 = vunpack.c.l.s8.bf16 %v1619_v16  ;;  %v1472_v54 = vld [vmem:[%s1876_s3 + $0x38] sm:$0xff]   ;;  %v1473_v55 = vld [vmem:[%s1876_s3 + $0x30] sm:$0xff]   ;;  %s1552_s18 = smov [#allocation4]  }
  0x1c   :  { %1391 = vmatprep.subr.bf16.mxu1 %v1471_v43  ;;  %v1551_v48 = vmov 0   ;;  %v471_v49 = vunpack.c.h.s8.bf16 %v1619_v16  ;;  %v472_v50 = vunpack.c.l.s8.bf16 %v1593_v0  ;;  %v473_v51 = vunpack.c.h.s8.bf16 %v1593_v0  ;;  %1345 = vmatprep.subr.bf16.mxu0 %v1472_v54  ;;  %v1480_v56 = vld [vmem:[%s1874_s1] sm:$0xff]   ;;  %v1474_v57 = vld [vmem:[%s1876_s3 + $0x28] sm:$0xff]   ;;  %v1476_v59 = vld [vmem:[%s1876_s3 + $0x18] sm:$0xff]  }
  0x1d   :  { %1462 = vset.pattern.permute.xlu0 %v1551_v48  ;;  %1463 = vset.pattern.permute.xlu1 %v1551_v48  ;;  %v474_v52 = vunpack.c.l.s8.bf16 %v1629_v22  ;;  %v475_v53 = vunpack.c.h.s8.bf16 %v1629_v22  ;;  %v1475_v58 = vld [vmem:[%s1876_s3 + $0x20] sm:$0xff]   ;;  %v1477_v60 = vld [vmem:[%s1876_s3 + $0x10] sm:$0xff]   ;;  %v1484_v61 = vld [vmem:[%s1875_s2 + $0x38] sm:$0xff]  }
  0x1e   :  { %380 = vadd.xlane.f32.xlu1 %v341_v39  ;;  %378 = vadd.xlane.f32.xlu0 %v340_v40  ;;  %v1478_v62 = vld [vmem:[%s1876_s3 + $0x8] sm:$0xff]   ;;  %v1485_v63 = vld [vmem:[%s1875_s2 + $0x30] sm:$0xff]   ;;  %v1479_v0 = vld [vmem:[%s1876_s3] sm:$0xff]  }
  0x1f   :  { %1392 = vmatpush3.bf16.msra.mxu1 %v1471_v43  ;;  %1346 = vmatpush3.bf16.msra.mxu0 %v1472_v54  ;;  %v1481_v1 = vld [vmem:[%s1874_s1 + $0x8] sm:$0xff]   ;;  %v1482_v2 = vld [vmem:[%s1874_s1 + $0x10] sm:$0xff]   ;;  %v1483_v3 = vld [vmem:[%s1874_s1 + $0x18] sm:$0xff]  }
  0x20   :  { %1347 = vmatprep.subr.bf16.mxu0 %v1473_v55  ;;  %1361 = vmatprep.mubr.bf16.mxu0 %v1480_v56  ;;  %v1486_v4 = vld [vmem:[%s1874_s1 + $0x20] sm:$0xff]   ;;  %v1487_v5 = vld [vmem:[%s1874_s1 + $0x28] sm:$0xff]   ;;  %v353_v18 = vld [vmem:[#allocation3 + $0x18] sm:$0xff] }
  0x21   :  { %1441 = vmatprep.subr.bf16.mxu1 %v1484_v61  ;;  %v358_v6 = vld [vmem:[#allocation3 + $0x40] sm:$0xff]  ;;  %v359_v12 = vld [vmem:[#allocation3 + $0x48] sm:$0xff]  ;;  %v352_v19 = vld [vmem:[#allocation3 + $0x10] sm:$0xff] }
  0x22   :  { %396 = vadd.xlane.f32.xlu1 %v349_v44  ;;  %394 = vadd.xlane.f32.xlu0 %v348_v45  ;;  %v350_v7 = vld [vmem:[#allocation3] sm:$0xff]  ;;  %v351_v13 = vld [vmem:[#allocation3 + $0x8] sm:$0xff]  ;;  %v361_v24 = vld [vmem:[#allocation3 + $0x58] sm:$0xff] }
  0x23   :  { %1394 = vmatmul.mubr.bf16.vlgmr.msra.gmra.mxu1 %v469_v46  ;;  %1348 = vmatpush3.bf16.msra.mxu0 %v1473_v55  ;;  %v360_v25 = vld [vmem:[#allocation3 + $0x50] sm:$0xff]  ;;  %v355_v31 = vld [vmem:[#allocation3 + $0x28] sm:$0xff]  ;;  %v354_v32 = vld [vmem:[#allocation3 + $0x20] sm:$0xff] }
  0x24   :  { %1397 = vmatprep.mubr.bf16.mxu1 %v470_v47  ;;  %1349 = vmatprep.subr.bf16.mxu0 %v1474_v57  ;;  %v363_v39 = vld [vmem:[#allocation3 + $0x68] sm:$0xff]  ;;  %v362_v40 = vld [vmem:[#allocation3 + $0x60] sm:$0xff]  ;;  %v357_v47 = vld [vmem:[#allocation3 + $0x38] sm:$0xff] }
  0x25   :  { %1449 = vmatpush3.bf16.msra.mxu1 %v1484_v61  ;;  %v1488_v46 = vld [vmem:[%s1875_s2 + $0x28] sm:$0xff]   ;;  %v356_v48 = vld [vmem:[#allocation3 + $0x30] sm:$0xff]  ;;  %v365_v56 = vld [vmem:[#allocation3 + $0x78] sm:$0xff] }
  0x26   :  { %1442 = vmatprep.subr.bf16.mxu1 %v1485_v63 }
  0x27   :  { %1350 = vmatpush3.bf16.msra.mxu0 %v1474_v57  ;;  %v1489_v57 = vld [vmem:[%s1875_s2 + $0x20] sm:$0xff]  }
  0x28   :  { %1351 = vmatprep.subr.bf16.mxu0 %v1475_v58 }
  0x29   :  { %1450 = vmatpush3.bf16.msra.mxu1 %v1485_v63 }
  0x2a   :  { %1443 = vmatprep.subr.bf16.mxu1 %v1488_v46 }
  0x2b   :  { %1398 = vmatmul.mubr.bf16.gmra.mxu1 %v471_v49  ;;  %1352 = vmatpush3.bf16.msra.mxu0 %v1475_v58  ;;  %v364_v58 = vld [vmem:[#allocation3 + $0x70] sm:$0xff] }
  0x2c   :  { %1401 = vmatprep.mubr.bf16.mxu1 %v472_v50  ;;  %1353 = vmatprep.subr.bf16.mxu0 %v1476_v59 }
  0x2d   :  { %1451 = vmatpush3.bf16.msra.mxu1 %v1488_v46 }
  0x2e   :  { %1444 = vmatprep.subr.bf16.mxu1 %v1489_v57 }
  0x2f   :  { %1354 = vmatpush3.bf16.msra.mxu0 %v1476_v59 }
  0x30   :  { %1355 = vmatprep.subr.bf16.mxu0 %v1477_v60 }
  0x31   :  { %1452 = vmatpush3.bf16.msra.mxu1 %v1489_v57 }
  0x33   :  { %1402 = vmatmul.mubr.bf16.gmra.mxu1 %v473_v51  ;;  %1356 = vmatpush3.bf16.msra.mxu0 %v1477_v60 }
  0x34   :  { %1405 = vmatprep.mubr.bf16.mxu1 %v474_v52  ;;  %1357 = vmatprep.subr.bf16.mxu0 %v1478_v62 }
  0x37   :  { %1358 = vmatpush3.bf16.msra.mxu0 %v1478_v62 }
  0x38   :  { %1359 = vmatprep.subr.bf16.mxu0 %v1479_v0 }
  0x3b   :  { %1406 = vmatmul.mubr.bf16.gmra.mxu1 %v475_v53  ;;  %1360 = vmatpush3.bf16.msra.mxu0 %v1479_v0 }
  0x3c   :  { %1409 = vmatprep.subr.bf16.mxu0 %v1484_v61 }
  0x3e   :  { %1362 = vmatmul.mubr.bf16.vlgmr.msra.gmra.mxu0 %v1481_v1  ;;  %v1491_v1 = vld [vmem:[%s1874_s1 + $0x38] sm:$0xff]  }
  0x3f   :  { %1365 = vmatprep.mubr.bf16.mxu0 %v1482_v2  ;;  %1410 = vmatpush3.bf16.msra.mxu0 %v1484_v61  ;;  %v1490_v61 = vld [vmem:[%s1874_s1 + $0x30] sm:$0xff]  }
  0x40   :  { %1411 = vmatprep.subr.bf16.mxu0 %v1485_v63 }
  0x43   :  { %1412 = vmatpush3.bf16.msra.mxu0 %v1485_v63 }
  0x44   :  { %1413 = vmatprep.subr.bf16.mxu0 %v1488_v46 }
  0x46   :  { %1366 = vmatmul.mubr.bf16.gmra.mxu0 %v1483_v3 }
  0x47   :  { %1369 = vmatprep.mubr.bf16.mxu0 %v1486_v4  ;;  %1414 = vmatpush3.bf16.msra.mxu0 %v1488_v46 }
  0x48   :  { %1415 = vmatprep.subr.bf16.mxu0 %v1489_v57 }
  0x4b   :  { %1416 = vmatpush3.bf16.msra.mxu0 %v1489_v57 }
  0x4e   :  { %1370 = vmatmul.mubr.bf16.gmra.mxu0 %v1487_v5  ;;  %v1492_v5 = vld [vmem:[%s1875_s2 + $0x18] sm:$0xff]  }
  0x4f   :  { %1373 = vmatprep.mubr.bf16.mxu0 %v1490_v61  ;;  %1417 = vmatprep.subr.bf16.mxu0 %v1492_v5 }
  0x50   :  { %1445 = vmatprep.subr.bf16.mxu1 %v1492_v5  ;;  %1418 = vmatpush3.bf16.msra.mxu0 %v1492_v5 }
  0x51   :  { %1453 = vmatpush3.bf16.msra.mxu1 %v1492_v5 }
  0x56   :  { %1374 = vmatmul.mubr.bf16.gmra.mxu0 %v1491_v1 }
  0x8f   :  { %v383_v8 = vpop.xlane.xlu1 %382  ;;  %v367_v9 = vpop.xlane.xlu0 %366 }
  0x90   :  { %v406_v10 = vadd.f32 %v383_v8, %v358_v6  ;;  %v398_v11 = vadd.f32 %v367_v9, %v350_v7 }
  0x92   :  { %423 = vst.msk [vmem:[#allocation3 + $0x40] sm:$0xff] %vm44_vm0, %v406_v10  ;;  %415 = vst.msk [vmem:[#allocation3] sm:$0xff] %vm44_vm0, %v398_v11  ;;  %v1493_v10 = vld [vmem:[%s1875_s2 + $0x10] sm:$0xff]  }
  0x93   :  { %v385_v14 = vpop.xlane.xlu1 %384  ;;  %v369_v15 = vpop.xlane.xlu0 %368  ;;  %1419 = vmatprep.subr.bf16.mxu0 %v1493_v10  ;;  %1446 = vmatprep.subr.bf16.mxu1 %v1493_v10 }
  0x94   :  { %v407_v16 = vadd.f32 %v385_v14, %v359_v12  ;;  %v399_v17 = vadd.f32 %v369_v15, %v351_v13  ;;  %1420 = vmatpush3.bf16.msra.mxu0 %v1493_v10  ;;  %1454 = vmatpush3.bf16.msra.mxu1 %v1493_v10  ;;  %v1494_v15 = vld [vmem:[%s1875_s2 + $0x8] sm:$0xff]  }
  0x95   :  { %1421 = vmatprep.subr.bf16.mxu0 %v1494_v15  ;;  %1447 = vmatprep.subr.bf16.mxu1 %v1494_v15 }
  0x96   :  { %424 = vst.msk [vmem:[#allocation3 + $0x48] sm:$0xff] %vm44_vm0, %v407_v16  ;;  %416 = vst.msk [vmem:[#allocation3 + $0x8] sm:$0xff] %vm44_vm0, %v399_v17 }
  0x97   :  { %v373_v20 = vpop.xlane.xlu1 %372  ;;  %v371_v21 = vpop.xlane.xlu0 %370 }
  0x98   :  { %v401_v22 = vadd.f32 %v373_v20, %v353_v18  ;;  %v400_v23 = vadd.f32 %v371_v21, %v352_v19  ;;  %1422 = vmatpush3.bf16.msra.mxu0 %v1494_v15  ;;  %1455 = vmatpush3.bf16.msra.mxu1 %v1494_v15 }
  0x99   :  { %v656_v26 = vld [vmem:[#allocation3] sm:$0xff] }
  0x9a   :  { %418 = vst.msk [vmem:[#allocation3 + $0x18] sm:$0xff] %vm44_vm0, %v401_v22  ;;  %417 = vst.msk [vmem:[#allocation3 + $0x10] sm:$0xff] %vm44_vm0, %v400_v23  ;;  %1496 = vrcp.f32 %v656_v26  ;;  %v1728_v34 = vld [vmem:[#allocation3 + $0x40] sm:$0xff]  ;;  %vm672_vm1 = vcmp.gt.f32.partialorder %v656_v26, 0.0 }
  0x9b   :  { %v389_v27 = vpop.xlane.xlu1 %388  ;;  %v387_v28 = vpop.xlane.xlu0 %386  ;;  %vm680_vm3 = vcmp.gt.f32.partialorder %v1728_v34, 0.0  ;;  %v1495_v22 = vld [vmem:[%s1875_s2] sm:$0xff]  }
  0x9c   :  { %v409_v29 = vadd.f32 %v389_v27, %v361_v24  ;;  %v408_v30 = vadd.f32 %v387_v28, %v360_v25  ;;  %1423 = vmatprep.subr.bf16.mxu0 %v1495_v22  ;;  %1448 = vmatprep.subr.bf16.mxu1 %v1495_v22 }
  0x9d   :  { %v657_v33 = vld [vmem:[#allocation3 + $0x8] sm:$0xff]  ;;  %1424 = vmatpush3.bf16.msra.mxu0 %v1495_v22  ;;  %1456 = vmatpush3.bf16.msra.mxu1 %v1495_v22 }
  0x9e   :  { %426 = vst.msk [vmem:[#allocation3 + $0x58] sm:$0xff] %vm44_vm0, %v409_v29  ;;  %425 = vst.msk [vmem:[#allocation3 + $0x50] sm:$0xff] %vm44_vm0, %v408_v30  ;;  %1498 = vrcp.f32 %v657_v33  ;;  %v1733_v41 = vld [vmem:[#allocation3 + $0x48] sm:$0xff]  ;;  %vm673_vm2 = vcmp.gt.f32.partialorder %v657_v33, 0.0 }
  0x9f   :  { %v377_v35 = vpop.xlane.xlu1 %376  ;;  %v375_v36 = vpop.xlane.xlu0 %374  ;;  %1500 = vrcp.f32 %v1728_v34  ;;  %vm681_vm4 = vcmp.gt.f32.partialorder %v1733_v41, 0.0 }
  0xa0   :  { %v403_v37 = vadd.f32 %v377_v35, %v355_v31  ;;  %v402_v38 = vadd.f32 %v375_v36, %v354_v32  ;;  %1502 = vrcp.f32 %v1733_v41 }
  0xa1   :  { %v1741_v49 = vld [vmem:[#allocation3 + $0x10] sm:$0xff]  ;;  %v1751_v60 = vld [vmem:[#allocation3 + $0x18] sm:$0xff] }
  0xa2   :  { %420 = vst.msk [vmem:[#allocation3 + $0x28] sm:$0xff] %vm44_vm0, %v403_v37  ;;  %419 = vst.msk [vmem:[#allocation3 + $0x20] sm:$0xff] %vm44_vm0, %v402_v38  ;;  %1504 = vrcp.f32 %v1741_v49  ;;  %vm674_vm6 = vcmp.gt.f32.partialorder %v1741_v49, 0.0  ;;  %vm675_vm7 = vcmp.gt.f32.partialorder %v1751_v60, 0.0 }
  0xa3   :  { %v393_v42 = vpop.xlane.xlu1 %392  ;;  %v391_v43 = vpop.xlane.xlu0 %390 }
  0xa4   :  { %v411_v44 = vadd.f32 %v393_v42, %v363_v39  ;;  %v410_v45 = vadd.f32 %v391_v43, %v362_v40 }
  0xa5   :  { %v1766_v8 = vld [vmem:[#allocation3 + $0x50] sm:$0xff]  ;;  %v667_v13 = vld [vmem:[#allocation3 + $0x58] sm:$0xff] }
  0xa6   :  { %428 = vst.msk [vmem:[#allocation3 + $0x68] sm:$0xff] %vm44_vm0, %v411_v44  ;;  %427 = vst.msk [vmem:[#allocation3 + $0x60] sm:$0xff] %vm44_vm0, %v410_v45  ;;  %vm682_vm9 = vcmp.gt.f32.partialorder %v1766_v8, 0.0  ;;  %vm683_vm11 = vcmp.gt.f32.partialorder %v667_v13, 0.0 }
  0xa7   :  { %v1497_v50 = vpop.eup %1496  ;;  %v381_v51 = vpop.xlane.xlu1 %380 }
  0xa8   :  { %v379_v52 = vpop.xlane.xlu0 %378  ;;  %v405_v53 = vadd.f32 %v381_v51, %v357_v47  ;;  %v720_v54 = vsel %vm672_vm1, %v1497_v50, 0.0 }
  0xa9   :  { %v404_v55 = vadd.f32 %v379_v52, %v356_v48  ;;  %754 = vperm.xlu0 %1462, %v720_v54   ;;  %v1749_v59 = vld [vmem:[#allocation3 + $0x28] sm:$0xff]  ;;  %v660_v18 = vld [vmem:[#allocation3 + $0x20] sm:$0xff] }
  0xaa   :  { %422 = vst.msk [vmem:[#allocation3 + $0x38] sm:$0xff] %vm44_vm0, %v405_v53  ;;  %1506 = vrcp.f32 %v1749_v59  ;;  %vm677_vm5 = vcmp.gt.f32.partialorder %v1749_v59, 0.0  ;;  %vm676_vm13 = vcmp.gt.f32.partialorder %v660_v18, 0.0 }
  0xab   :  { %421 = vst.msk [vmem:[#allocation3 + $0x30] sm:$0xff] %vm44_vm0, %v404_v55  ;;  %v1499_v62 = vpop.eup %1498  ;;  %v397_v63 = vpop.xlane.xlu1 %396  ;;  %1508 = vrcp.f32 %v1751_v60 }
  0xac   :  { %v395_v0 = vpop.xlane.xlu0 %394  ;;  %v413_v2 = vadd.f32 %v397_v63, %v365_v56  ;;  %v721_v3 = vsel %vm673_vm2, %v1499_v62, 0.0  ;;  %v1501_v6 = vpop.eup %1500 }
  0xad   :  { %v412_v4 = vadd.f32 %v395_v0, %v364_v58  ;;  %759 = vperm.xlu1 %1463, %v721_v3   ;;  %v669_v7 = vld [vmem:[#allocation3 + $0x68] sm:$0xff]  ;;  %v728_v9 = vsel %vm680_vm3, %v1501_v6, 0.0  ;;  %v1503_v11 = vpop.eup %1502  ;;  %v668_v24 = vld [vmem:[#allocation3 + $0x60] sm:$0xff] }
  0xae   :  { %430 = vst.msk [vmem:[#allocation3 + $0x78] sm:$0xff] %vm44_vm0, %v413_v2  ;;  %1510 = vrcp.f32 %v669_v7  ;;  %v729_v14 = vsel %vm681_vm4, %v1503_v11, 0.0  ;;  %vm685_vm8 = vcmp.gt.f32.partialorder %v669_v7, 0.0  ;;  %vm684_vm14 = vcmp.gt.f32.partialorder %v668_v24, 0.0 }
  0xaf   :  { %429 = vst.msk [vmem:[#allocation3 + $0x70] sm:$0xff] %vm44_vm0, %v412_v4  ;;  %1512 = vrcp.f32 %v1766_v8  ;;  %v1505_v16 = vpop.eup %1504 }
  0xb0   :  { %v722_v20 = vsel %vm674_vm6, %v1505_v16, 0.0 }
  0xb1   :  { %794 = vperm.xlu1 %1463, %v728_v9   ;;  %v663_v12 = vld [vmem:[#allocation3 + $0x38] sm:$0xff] }
  0xb2   :  { %1514 = vrcp.f32 %v663_v12  ;;  %vm679_vm10 = vcmp.gt.f32.partialorder %v663_v12, 0.0  ;;  %v662_v29 = vld [vmem:[#allocation3 + $0x30] sm:$0xff] }
  0xb3   :  { %1516 = vrcp.f32 %v667_v13  ;;  %vm678_vm15 = vcmp.gt.f32.partialorder %v662_v29, 0.0 }
  0xb5   :  { %799 = vperm.xlu1 %1463, %v729_v14   ;;  %v671_v17 = vld [vmem:[#allocation3 + $0x78] sm:$0xff] }
  0xb6   :  { %1518 = vrcp.f32 %v671_v17  ;;  %vm687_vm12 = vcmp.gt.f32.partialorder %v671_v17, 0.0  ;;  %v670_v34 = vld [vmem:[#allocation3 + $0x70] sm:$0xff] }
  0xb7   :  { %v1507_v19 = vpop.eup %1506  ;;  %1520 = vrcp.f32 %v660_v18  ;;  %vm686_vm0 = vcmp.gt.f32.partialorder %v670_v34, 0.0 }
  0xb8   :  { %v725_v21 = vsel %vm677_vm5, %v1507_v19, 0.0  ;;  %v1509_v23 = vpop.eup %1508  ;;  %1522 = vrcp.f32 %v668_v24 }
  0xb9   :  { %764 = vperm.xlu1 %1463, %v722_v20   ;;  %779 = vperm.xlu0 %1462, %v725_v21   ;;  %v723_v26 = vsel %vm675_vm7, %v1509_v23, 0.0  ;;  %1524 = vrcp.f32 %v662_v29 }
  0xba   :  { %1526 = vrcp.f32 %v670_v34 }
  0xbb   :  { %v1511_v25 = vpop.eup %1510 }
  0xbc   :  { %v733_v27 = vsel %vm685_vm8, %v1511_v25, 0.0  ;;  %v1513_v28 = vpop.eup %1512 }
  0xbd   :  { %769 = vperm.xlu1 %1463, %v723_v26   ;;  %819 = vperm.xlu0 %1462, %v733_v27   ;;  %v730_v31 = vsel %vm682_vm9, %v1513_v28, 0.0 }
  0xbf   :  { %v1515_v30 = vpop.eup %1514 }
  0xc0   :  { %v727_v32 = vsel %vm679_vm10, %v1515_v30, 0.0  ;;  %v1517_v33 = vpop.eup %1516 }
  0xc1   :  { %804 = vperm.xlu1 %1463, %v730_v31   ;;  %789 = vperm.xlu0 %1462, %v727_v32   ;;  %v731_v36 = vsel %vm683_vm11, %v1517_v33, 0.0 }
  0xc3   :  { %v1519_v35 = vpop.eup %1518 }
  0xc4   :  { %v735_v37 = vsel %vm687_vm12, %v1519_v35, 0.0  ;;  %v1521_v38 = vpop.eup %1520 }
  0xc5   :  { %809 = vperm.xlu1 %1463, %v731_v36   ;;  %829 = vperm.xlu0 %1462, %v735_v37   ;;  %v724_v39 = vsel %vm676_vm13, %v1521_v38, 0.0  ;;  %v1523_v40 = vpop.eup %1522 }
  0xc6   :  { %v732_v41 = vsel %vm684_vm14, %v1523_v40, 0.0  ;;  %v1525_v42 = vpop.eup %1524 }
  0xc7   :  { %v726_v43 = vsel %vm678_vm15, %v1525_v42, 0.0  ;;  %v1527_v44 = vpop.eup %1526 }
  0xc8   :  { %v734_v45 = vsel %vm686_vm0, %v1527_v44, 0.0 }
  0xc9   :  { %774 = vperm.xlu1 %1463, %v724_v39  }
  0xcd   :  { %814 = vperm.xlu1 %1463, %v732_v41  }
  0xd1   :  { %784 = vperm.xlu1 %1463, %v726_v43  }
  0xd5   :  { %824 = vperm.xlu1 %1463, %v734_v45  }
  0xe3   :  { %v1395_v46 = vpop.f32.mrf.mxu1 }
  0xe5   :  { %v558_v47 = vpop.f32.mrf.mxu1 }
  0xe7   :  { %v1396_v48 = vpop.f32.mrf.mxu1 }
  0xe9   :  { %v561_v49 = vpop.f32.mrf.mxu1 }
  0xeb   :  { %v1399_v50 = vpop.f32.mrf.mxu1 }
  0xed   :  { %v574_v51 = vpop.f32.mrf.mxu1 }
  0xef   :  { %v1400_v52 = vpop.f32.mrf.mxu1 }
  0xf1   :  { %v577_v53 = vpop.f32.mrf.mxu1 }
  0xf3   :  { %v1403_v54 = vpop.f32.mrf.mxu1 }
  0xf5   :  { %v590_v56 = vpop.f32.mrf.mxu1 }
  0xf7   :  { %v1404_v60 = vpop.f32.mrf.mxu1 }
  0xf9   :  { %v593_v63 = vpop.f32.mrf.mxu1 }
  0xfb   :  { %v1407_v8 = vpop.f32.mrf.mxu1 }
  0xfd   :  { %v606_v12 = vpop.f32.mrf.mxu1 }
  0xfe   :  { %v1363_v38 = vpop.f32.mrf.mxu0 }
  0xff   :  { %v1408_v17 = vpop.f32.mrf.mxu1 }
 0x100   :  { %v235_v39 = vpop.f32.mrf.mxu0 }
 0x101   :  { %v609_v22 = vpop.f32.mrf.mxu1 }
 0x102   :  { %v1364_v40 = vpop.f32.mrf.mxu0 }
 0x104   :  { %v238_v41 = vpop.f32.mrf.mxu0 }
 0x106   :  { %v1367_v42 = vpop.f32.mrf.mxu0 }
 0x108   :  { %v251_v43 = vpop.f32.mrf.mxu0 }
 0x10a   :  { %v1786_v44 = vpop.f32.mrf.mxu0 }
 0x10c   :  { %v1788_v45 = vpop.f32.mrf.mxu0 }
 0x124   :  { %v755_v55 = vpop.permute.xlu0 %754 }
 0x125   :  { %v832_v58 = vmul.f32 %v755_v55, %v558_v47 }
 0x128   :  { %v760_v57 = vpop.permute.xlu1 %759 }
 0x129   :  { %v833_v59 = vmul.f32 %v760_v57, %v561_v49 }
 0x12b   :  { %v848_v61 = vpack.c.bf16 %v833_v59, %v832_v58 }
 0x12c   :  { %v795_v62 = vpop.permute.xlu1 %794 }
 0x12d   :  { %1425 = vmatprep.mubr.bf16.mxu0 %v848_v61  ;;  %v840_v1 = vmul.f32 %v795_v62, %v590_v56 }
 0x130   :  { %v800_v0 = vpop.permute.xlu1 %799 }
 0x131   :  { %v841_v2 = vmul.f32 %v800_v0, %v593_v63 }
 0x133   :  { %v852_v3 = vpack.c.bf16 %v841_v2, %v840_v1 }
 0x134   :  { %v765_v4 = vpop.permute.xlu1 %764  ;;  %v780_v10 = vpop.permute.xlu0 %779 }
 0x135   :  { %1433 = vmatprep.mubr.bf16.mxu1 %v852_v3  ;;  %v834_v6 = vmul.f32 %v1395_v46, %v765_v4  ;;  %v837_v20 = vmul.f32 %v780_v10, %v577_v53  ;;  %v1371_v46 = vpop.f32.mrf.mxu0  ;;  %v1797_v53 = vld [vmem:[%s1877_s4] ss:$0 sm:$0xff]  ;;  %s1168_s4 = sshll.u32 %s1552_s18, 4  ;;  %s1169_s4 = int_to_ptr.vmem [resolvable:$true] %s1168_s4 }
 0x136   :  { %v244_v55 = vadd.f32 %v1363_v38, %v1797_v53  ;;  %v236_v57 = vadd.f32 %v1797_v53, %v235_v39  ;;  %v239_v63 = vadd.f32 %v1797_v53, %v238_v41  ;;  %v276_v2 = vadd.f32 %v1371_v46, %v1797_v53  ;;  %s1528_s21 = scalar_lea.vmem %s1169_s4, 1024  ;;  %p1533_p1 = scmp.lt.s32.totalorder %s1169_s4, %s1169_s4 }
 0x137   :  { %v267_v47 = vpop.f32.mrf.mxu0  ;;  %p1529_p0 = scmp.ne.s32.totalorder %s1169_s4, %s1528_s21  ;;  %p1534_p2 = scmp.lt.s32.totalorder %s1528_s21, %s1528_s21 }
 0x138   :  { %v770_v5 = vpop.permute.xlu1 %769  ;;  %v820_v16 = vpop.permute.xlu0 %819 }
 0x139   :  { %v835_v7 = vmul.f32 %v1396_v48, %v770_v5  ;;  %v845_v26 = vmul.f32 %v820_v16, %v609_v22  ;;  %v1372_v48 = vpop.f32.mrf.mxu0  ;;  %p1535_p3 = por %p1534_p2, %p1533_p1 }
 0x13b   :  { %v849_v9 = vpack.c.bf16 %v835_v7, %v834_v6  ;;  %v270_v49 = vpop.f32.mrf.mxu0  ;;  %v268_v6 = vadd.f32 %v1797_v53, %v267_v47  ;;  %p1536_p4 = pnand %p1535_p3, %p1529_p0 }
 0x13c   :  { %v805_v11 = vpop.permute.xlu1 %804  ;;  %v790_v24 = vpop.permute.xlu0 %789 }
 0x13d   :  { %1426 = vmatmul.mubr.bf16.vlgmr.msra.gmra.mxu0 %v849_v9  ;;  %v842_v14 = vmul.f32 %v1403_v54, %v805_v11  ;;  %v839_v30 = vmul.f32 %v1400_v52, %v790_v24 }
 0x140   :  { %v810_v13 = vpop.permute.xlu1 %809  ;;  %v830_v32 = vpop.permute.xlu0 %829 }
 0x141   :  { %v843_v15 = vmul.f32 %v1404_v60, %v810_v13  ;;  %v847_v35 = vmul.f32 %v1408_v17, %v830_v32  ;;  %v247_v60 = vadd.f32 %v1364_v40, %v1797_v53  ;;  %v279_v13 = vadd.f32 %v1372_v48, %v1797_v53 }
 0x142   :  { %v271_v17 = vadd.f32 %v1797_v53, %v270_v49  ;;  %v263_v32 = vadd.f32 %v1786_v44, %v1797_v53 }
 0x143   :  { %v853_v18 = vpack.c.bf16 %v843_v15, %v842_v14 }
 0x144   :  { %v775_v19 = vpop.permute.xlu1 %774 }
 0x145   :  { %v836_v21 = vmul.f32 %v775_v19, %v574_v51  ;;  %1434 = vmatmul.mubr.bf16.vlgmr.msra.gmra.mxu1 %v853_v18 }
 0x147   :  { %v850_v23 = vpack.c.bf16 %v837_v20, %v836_v21 }
 0x148   :  { %v815_v25 = vpop.permute.xlu1 %814 }
 0x149   :  { %v844_v27 = vmul.f32 %v815_v25, %v606_v12  ;;  %1429 = vmatprep.mubr.bf16.mxu0 %v850_v23 }
 0x14b   :  { %v854_v28 = vpack.c.bf16 %v845_v26, %v844_v27  ;;  %v260_v26 = vadd.f32 %v1367_v42, %v1797_v53 }
 0x14c   :  { %v785_v29 = vpop.permute.xlu1 %784 }
 0x14d   :  { %v838_v31 = vmul.f32 %v1399_v50, %v785_v29  ;;  %1437 = vmatprep.mubr.bf16.mxu1 %v854_v28  ;;  %v1375_v50 = vpop.f32.mrf.mxu0  ;;  %v252_v29 = vadd.f32 %v1797_v53, %v251_v43 }
 0x14f   :  { %v851_v33 = vpack.c.bf16 %v839_v30, %v838_v31  ;;  %v1790_v51 = vpop.f32.mrf.mxu0 }
 0x150   :  { %v825_v34 = vpop.permute.xlu1 %824  ;;  %v284_v38 = vadd.f32 %v1797_v53, %v1790_v51 }
 0x151   :  { %v846_v36 = vmul.f32 %v1407_v8, %v825_v34  ;;  %1430 = vmatmul.mubr.bf16.gmra.mxu0 %v851_v33  ;;  %v1792_v52 = vpop.f32.mrf.mxu0  ;;  %v292_v33 = vadd.f32 %v1375_v50, %v1797_v53 }
 0x152   :  { %v295_v41 = vadd.f32 %v1792_v52, %v1797_v53 }
 0x153   :  { %v855_v37 = vpack.c.bf16 %v847_v35, %v846_v36  ;;  %v1799_v54 = vpop.f32.mrf.mxu0 }
 0x154   :  { %v287_v48 = vadd.f32 %v1797_v53, %v1799_v54 }
 0x155   :  { %1438 = vmatmul.mubr.bf16.gmra.mxu1 %v855_v37  ;;  %v255_v37 = vadd.f32 %v1797_v53, %v1788_v45 }
 0x1fd   :  { %v1427_v56 = vpop.f32.mrf.mxu0 }
 0x1fe   :  { %v1035_v58 = vadd.f32 %v1427_v56, %v244_v55 }
 0x1ff   :  { %v970_v59 = vpop.f32.mrf.mxu0 }
 0x200   :  { %1051 = vst [vmem:[%s1878_s5 + $0x10] sm:$0xff] %v1035_v58  ;;  %v1033_v61 = vadd.f32 %v970_v59, %v236_v57  ;;  %v1067_v3 = vmax.f32 %v1035_v58, 0.0 }
 0x201   :  { %v1428_v62 = vpop.f32.mrf.mxu0 }
 0x202   :  { %1049 = vst [vmem:[%s1878_s5] sm:$0xff] %v1033_v61  ;;  %v1036_v0 = vadd.f32 %v1428_v62, %v247_v60  ;;  %v1065_v8 = vmax.f32 %v1033_v61, 0.0 }
 0x203   :  { %v973_v1 = vpop.f32.mrf.mxu0 }
 0x204   :  { %1052 = vst [vmem:[%s1878_s5 + $0x18] sm:$0xff] %v1036_v0  ;;  %v1068_v4 = vmax.f32 %v1036_v0, 0.0  ;;  %v1034_v5 = vadd.f32 %v973_v1, %v239_v63 }
 0x205   :  { %v1435_v7 = vpop.f32.mrf.mxu1 }
 0x206   :  { %v1258_v9 = vpack.c.bf16 %v1068_v4, %v1067_v3  ;;  %1050 = vst [vmem:[%s1878_s5 + $0x8] sm:$0xff] %v1034_v5  ;;  %v1066_v10 = vmax.f32 %v1034_v5, 0.0  ;;  %v1043_v11 = vadd.f32 %v1435_v7, %v276_v2 }
 0x207   :  { %v1002_v12 = vpop.f32.mrf.mxu1 }
 0x208   :  { %1290 = vst [vmem:[#allocation4 + $0x8] sm:$0xff] %v1258_v9   ;;  %v1253_v14 = vpack.c.bf16 %v1066_v10, %v1065_v8  ;;  %1059 = vst [vmem:[%s1878_s5 + $0x50] sm:$0xff] %v1043_v11  ;;  %v1041_v15 = vadd.f32 %v1002_v12, %v268_v6  ;;  %v1075_v20 = vmax.f32 %v1043_v11, 0.0 }
 0x209   :  { %v1436_v16 = vpop.f32.mrf.mxu1 }
 0x20a   :  { %1254 = vst [vmem:[#allocation4] sm:$0xff] %v1253_v14   ;;  %1057 = vst [vmem:[%s1878_s5 + $0x40] sm:$0xff] %v1041_v15  ;;  %v1044_v18 = vadd.f32 %v1436_v16, %v279_v13  ;;  %v1073_v23 = vmax.f32 %v1041_v15, 0.0 }
 0x20b   :  { %v1005_v19 = vpop.f32.mrf.mxu1 }
 0x20c   :  { %1060 = vst [vmem:[%s1878_s5 + $0x58] sm:$0xff] %v1044_v18  ;;  %v1076_v21 = vmax.f32 %v1044_v18, 0.0  ;;  %v1042_v22 = vadd.f32 %v1005_v19, %v271_v17 }
 0x20e   :  { %v1278_v24 = vpack.c.bf16 %v1076_v21, %v1075_v20  ;;  %1058 = vst [vmem:[%s1878_s5 + $0x48] sm:$0xff] %v1042_v22  ;;  %v1074_v25 = vmax.f32 %v1042_v22, 0.0 }
 0x210   :  { %1294 = vst [vmem:[#allocation4 + $0x28] sm:$0xff] %v1278_v24   ;;  %v1273_v27 = vpack.c.bf16 %v1074_v25, %v1073_v23 }
 0x211   :  { %v1431_v28 = vpop.f32.mrf.mxu0 }
 0x212   :  { %1293 = vst [vmem:[#allocation4 + $0x20] sm:$0xff] %v1273_v27   ;;  %v1039_v30 = vadd.f32 %v1431_v28, %v260_v26 }
 0x213   :  { %v986_v31 = vpop.f32.mrf.mxu0 }
 0x214   :  { %1055 = vst [vmem:[%s1878_s5 + $0x30] sm:$0xff] %v1039_v30  ;;  %v1037_v34 = vadd.f32 %v986_v31, %v252_v29  ;;  %v1071_v44 = vmax.f32 %v1039_v30, 0.0 }
 0x215   :  { %v1432_v35 = vpop.f32.mrf.mxu0  ;;  %v1439_v36 = vpop.f32.mrf.mxu1 }
 0x216   :  { %1053 = vst [vmem:[%s1878_s5 + $0x20] sm:$0xff] %v1037_v34  ;;  %v1040_v39 = vadd.f32 %v1432_v35, %v263_v32  ;;  %v1047_v40 = vadd.f32 %v1439_v36, %v292_v33  ;;  %v1069_v50 = vmax.f32 %v1037_v34, 0.0 }
 0x217   :  { %v989_v42 = vpop.f32.mrf.mxu0  ;;  %v1018_v43 = vpop.f32.mrf.mxu1 }
 0x218   :  { %1056 = vst [vmem:[%s1878_s5 + $0x38] sm:$0xff] %v1040_v39  ;;  %v1072_v45 = vmax.f32 %v1040_v39, 0.0  ;;  %1063 = vst [vmem:[%s1878_s5 + $0x70] sm:$0xff] %v1047_v40  ;;  %v1038_v46 = vadd.f32 %v989_v42, %v255_v37  ;;  %v1045_v47 = vadd.f32 %v1018_v43, %v284_v38  ;;  %v1079_v57 = vmax.f32 %v1047_v40, 0.0 }
 0x219   :  { %v1440_v49 = vpop.f32.mrf.mxu1 }
 0x21a   :  { %v1268_v51 = vpack.c.bf16 %v1072_v45, %v1071_v44  ;;  %1054 = vst [vmem:[%s1878_s5 + $0x28] sm:$0xff] %v1038_v46  ;;  %v1070_v52 = vmax.f32 %v1038_v46, 0.0  ;;  %1061 = vst [vmem:[%s1878_s5 + $0x60] sm:$0xff] %v1045_v47  ;;  %v1048_v55 = vadd.f32 %v1440_v49, %v295_v41  ;;  %v1077_v59 = vmax.f32 %v1045_v47, 0.0 }
 0x21b   :  { %v1021_v56 = vpop.f32.mrf.mxu1 }
 0x21c   :  { %1292 = vst [vmem:[#allocation4 + $0x18] sm:$0xff] %v1268_v51   ;;  %v1263_v58 = vpack.c.bf16 %v1070_v52, %v1069_v50  ;;  %1064 = vst [vmem:[%s1878_s5 + $0x78] sm:$0xff] %v1048_v55  ;;  %v1080_v53 = vmax.f32 %v1048_v55, 0.0  ;;  %v1046_v54 = vadd.f32 %v1021_v56, %v287_v48 }
 0x21e   :  { %1291 = vst [vmem:[#allocation4 + $0x10] sm:$0xff] %v1263_v58   ;;  %v1288_v60 = vpack.c.bf16 %v1080_v53, %v1079_v57  ;;  %1062 = vst [vmem:[%s1878_s5 + $0x68] sm:$0xff] %v1046_v54  ;;  %v1078_v61 = vmax.f32 %v1046_v54, 0.0 }
 0x220   :  { %1296 = vst [vmem:[#allocation4 + $0x38] sm:$0xff] %v1288_v60   ;;  %v1283_v62 = vpack.c.bf16 %v1078_v61, %v1077_v59 }
 0x222   :  { %1295 = vst [vmem:[#allocation4 + $0x30] sm:$0xff] %v1283_v62  }
 0x223   :  { %1539 = shalt.err (!%p1536_p4)
}
 0x224   :  { %s1553_s3 = smov 64   ;;  %s1554_s22 = smov 4  }
 0x225   :  { %1174 = dma.vmem_to_hbm [thread:$0]  %s1169_s4, 1024, %s1879_s6, [#allocation5], %s1553_s3, %s1553_s3, %s1554_s22  }
 0x226   :  { %1548 = dma.done.wait [#allocation5], 1024  }
 0x227   :  { %1549 = vsyncadd [#allocation5], 4294966272 }
 0x228   :  { %1180 = vsyncpa [#allocation5], 1 }

</bundles_post_ra>
